<compile_context>
chip_gen: v7x
topology: tpu7x:2x2x1
jax: 0.10.0
libtpu: 0.0.40
codegen_flags: <defaults>
</compile_context>

<pallas_src>
import functools

import jax
import jax.numpy as jnp
import numpy as np
from jax.experimental import pallas as pl
from jax.experimental.pallas import tpu as pltpu


def darnn_encoder_kernel(
    x_ref,        # (tB, T, N)  VMEM  input slab for this batch block (native layout)
    w_x_ref,      # (T, 1)      VMEM  attention weight, time-window part
    w_h_ref,      # (1, H)      VMEM  attention weight, hidden part
    w_c_ref,      # (1, H)      VMEM  attention weight, cell part
    w_ih_ref,     # (N, 4H)     VMEM  LSTM input->gates weight (transposed), bf16
    w_hh_ref,     # (H, 4H)     VMEM  LSTM hidden->gates weight (transposed), bf16
    b_ref,        # (1, 4H)     VMEM  b_ih + b_hh (f32)
    b_attn_ref,   # (1, 1)      SMEM  attention bias scalar
    out_w_ref,    # (tB, T, N)  VMEM  weighted inputs (final (B,T,N) layout)
    out_e_ref,    # (tB, T, H)  VMEM  encoded hidden  (final (B,T,H) layout)
):
    tB, T, N = x_ref.shape
    H = w_h_ref.shape[1]

    # ---- loop-invariant preamble (runs once per batch block) ---------------
    x_all = x_ref[...]                                        # (tB, T, N), one read
    w_x = w_x_ref[...]                                        # (T, 1)
    b_attn = b_attn_ref[0, 0]
    # time-window part of the attention score (x is only read here + per-step slice)
    sx = jnp.sum(x_all * w_x[None, :, :], axis=1) + b_attn    # (tB, N)

    w_h = jnp.broadcast_to(w_h_ref[...], (tB, H))             # hoisted broadcasts
    w_c = jnp.broadcast_to(w_c_ref[...], (tB, H))
    b_g = jnp.broadcast_to(b_ref[...], (tB, 4 * H))
    w_ih = w_ih_ref[...]                                      # (N, 4H) bf16
    w_hh = w_hh_ref[...]                                      # (H, 4H) bf16

    h = jnp.zeros((tB, H), jnp.float32)
    c = jnp.zeros((tB, H), jnp.float32)

    # TODO(synk): for long sequences switch this static unroll to a T-blocked grid
    # axis with h/c in persistent VMEM scratch (bounds instruction memory).
    for t in range(T):
        # ---- input attention over the N drivers -----------------------------
        # Note: the h/c contributions (and b_attn) are constant across the driver
        # axis, so they cancel in the softmax; kept for structural fidelity.
        score_hc = (jnp.sum(h * w_h, axis=1, keepdims=True)
                    + jnp.sum(c * w_c, axis=1, keepdims=True))        # (tB, 1)
        e = sx + score_hc                                             # (tB, N)
        e_max = jnp.max(e, axis=1, keepdims=True)
        p = jnp.exp(e - e_max)
        denom = jnp.sum(p, axis=1, keepdims=True)
        attn = p * pl.reciprocal(denom, approx=True)                  # (tB, N)

        x_t = x_all[:, t, :]                                          # (tB, N)
        weighted = attn * x_t                                         # (tB, N)

        # ---- LSTM cell (PyTorch gate order i, f, g, o): two bf16 MXU dots ---
        gates = (jnp.dot(weighted.astype(jnp.bfloat16), w_ih,
                         preferred_element_type=jnp.float32)
                 + jnp.dot(h.astype(jnp.bfloat16), w_hh,
                           preferred_element_type=jnp.float32)
                 + b_g)                                               # (tB, 4H)
        # TODO(synk): at production sizes pad H to the 128-lane granule so the
        # gate slices below fall on vreg boundaries.
        i_g = jax.nn.sigmoid(gates[:, 0 * H:1 * H])
        f_g = jax.nn.sigmoid(gates[:, 1 * H:2 * H])
        g_g = jnp.tanh(gates[:, 2 * H:3 * H])
        o_g = jax.nn.sigmoid(gates[:, 3 * H:4 * H])
        c = f_g * c + i_g * g_g
        h = o_g * jnp.tanh(c)

        # direct stores in the final (B, T, .) layout
        out_w_ref[:, t, :] = weighted
        out_e_ref[:, t, :] = h


@functools.partial(jax.jit, static_argnums=2)
def darnn_encoder(input_data, params, hidden_size):
    """input_data: (B, T, input_size) f32 -> (input_weighted, input_encoded)."""
    B, T, N = input_data.shape
    H = hidden_size

    w_attn = params["attn_w"].astype(jnp.float32)     # (1, 2H + T)
    b_attn = params["attn_b"].astype(jnp.float32)     # (1,)
    w_ih = params["w_ih"].astype(jnp.float32)         # (4H, N)
    w_hh = params["w_hh"].astype(jnp.float32)         # (4H, H)
    b_ih = params["b_ih"].astype(jnp.float32)         # (4H,)
    b_hh = params["b_hh"].astype(jnp.float32)         # (4H,)

    # split attention weight: [hidden | cell | time-window]
    w_h = w_attn[:, :H]                                # (1, H)
    w_c = w_attn[:, H:2 * H]                           # (1, H)
    w_x = w_attn[:, 2 * H:].reshape(T, 1)              # (T, 1)

    w_ih_t = w_ih.T.astype(jnp.bfloat16)               # (N, 4H)
    w_hh_t = w_hh.T.astype(jnp.bfloat16)               # (H, 4H)
    b_lstm = (b_ih + b_hh)[None, :]                    # (1, 4H)
    b_attn_s = b_attn.reshape(1, 1)                    # SMEM scalar

    # batch tiling: the time recurrence is serial, so batch is the only axis we
    # stream / parallelise (shards across TensorCores on v7x).
    tB = B if B <= 8 else 8
    B_pad = ((B + tB - 1) // tB) * tB
    x = input_data.astype(jnp.float32)
    if B_pad != B:
        x = jnp.pad(x, ((0, B_pad - B), (0, 0), (0, 0)))
    nB = B_pad // tB

    # VMEM budget sized from the actual resident buffers (x / out blocks double-
    # buffered by the pipeline, plus the small weights), with a safe floor.
    def _nbytes(shape, dtype):
        return int(np.prod(shape)) * np.dtype(dtype).itemsize
    est = (2 * (_nbytes((tB, T, N), np.float32)
                + _nbytes((tB, T, N), np.float32)
                + _nbytes((tB, T, H), np.float32))
           + _nbytes((N, 4 * H), jnp.bfloat16) + _nbytes((H, 4 * H), jnp.bfloat16)
           + _nbytes((1, 4 * H), np.float32) + 2 * _nbytes((1, H), np.float32)
           + _nbytes((T, 1), np.float32))
    vmem_limit = int(min(64 * 2**20, max(16 * 2**20, 6 * est)))

    out_w, out_e = pl.pallas_call(
        darnn_encoder_kernel,
        out_shape=(jax.ShapeDtypeStruct((B_pad, T, N), jnp.float32),
                   jax.ShapeDtypeStruct((B_pad, T, H), jnp.float32)),
        grid_spec=pltpu.PrefetchScalarGridSpec(
            num_scalar_prefetch=0,
            grid=(nB,),
            in_specs=[
                pl.BlockSpec((tB, T, N), lambda b: (b, 0, 0)),     # x
                pl.BlockSpec((T, 1), lambda b: (0, 0)),            # w_x
                pl.BlockSpec((1, H), lambda b: (0, 0)),            # w_h
                pl.BlockSpec((1, H), lambda b: (0, 0)),            # w_c
                pl.BlockSpec((N, 4 * H), lambda b: (0, 0)),        # w_ih.T
                pl.BlockSpec((H, 4 * H), lambda b: (0, 0)),        # w_hh.T
                pl.BlockSpec((1, 4 * H), lambda b: (0, 0)),        # b_ih + b_hh
                pl.BlockSpec(memory_space=pltpu.MemorySpace.SMEM), # b_attn scalar
            ],
            out_specs=[
                pl.BlockSpec((tB, T, N), lambda b: (b, 0, 0)),
                pl.BlockSpec((tB, T, H), lambda b: (b, 0, 0)),
            ],
        ),
        compiler_params=pltpu.CompilerParams(
            dimension_semantics=("parallel",),
            vmem_limit_bytes=vmem_limit,
        ),
    )(x, w_x, w_h, w_c, w_ih_t, w_hh_t, b_lstm, b_attn_s)

    if B_pad != B:
        out_w = out_w[:B]
        out_e = out_e[:B]
    return out_w, out_e


def ref_forward(input_data, params, hidden_size):
    """Pure-JAX mirror of the PyTorch Encoder.forward (for verification)."""
    B, T, N = input_data.shape
    H = hidden_size
    w_attn, b_attn = params["attn_w"], params["attn_b"]
    w_ih, w_hh = params["w_ih"], params["w_hh"]
    b_ih, b_hh = params["b_ih"], params["b_hh"]

    h = jnp.zeros((B, H), jnp.float32)
    c = jnp.zeros((B, H), jnp.float32)
    xp = jnp.transpose(input_data, (0, 2, 1))                 # (B, N, T)
    iw_list, ie_list = [], []
    for t in range(T):
        h_rep = jnp.broadcast_to(h[:, None, :], (B, N, H))
        c_rep = jnp.broadcast_to(c[:, None, :], (B, N, H))
        cat = jnp.concatenate([h_rep, c_rep, xp], axis=2)     # (B, N, 2H+T)
        e = cat.reshape(B * N, 2 * H + T) @ w_attn.T + b_attn # (B*N, 1)
        attn = jax.nn.softmax(e.reshape(B, N), axis=1)
        weighted = attn * input_data[:, t, :]
        gates = weighted @ w_ih.T + b_ih + h @ w_hh.T + b_hh
        i_g = jax.nn.sigmoid(gates[:, :H])
        f_g = jax.nn.sigmoid(gates[:, H:2 * H])
        g_g = jnp.tanh(gates[:, 2 * H:3 * H])
        o_g = jax.nn.sigmoid(gates[:, 3 * H:])
        c = f_g * c + i_g * g_g
        h = o_g * jnp.tanh(c)
        iw_list.append(weighted)
        ie_list.append(h)
    return jnp.stack(iw_list, axis=1), jnp.stack(ie_list, axis=1)


if __name__ == "__main__":
    B, T, N, H = 2, 8, 16, 32   # batch, time steps, input_size (drivers), hidden_size

    key = jax.random.PRNGKey(0)
    k = jax.random.split(key, 7)
    bound_attn = 1.0 / float(np.sqrt(2 * H + T))
    bound_lstm = 1.0 / float(np.sqrt(H))
    params = {
        "attn_w": jax.random.uniform(k[0], (1, 2 * H + T), jnp.float32, -bound_attn, bound_attn),
        "attn_b": jax.random.uniform(k[1], (1,), jnp.float32, -bound_attn, bound_attn),
        "w_ih":   jax.random.uniform(k[2], (4 * H, N), jnp.float32, -bound_lstm, bound_lstm),
        "w_hh":   jax.random.uniform(k[3], (4 * H, H), jnp.float32, -bound_lstm, bound_lstm),
        "b_ih":   jax.random.uniform(k[4], (4 * H,), jnp.float32, -bound_lstm, bound_lstm),
        "b_hh":   jax.random.uniform(k[5], (4 * H,), jnp.float32, -bound_lstm, bound_lstm),
    }
    x = jax.random.normal(k[6], (B, T, N), jnp.float32)

    input_weighted, input_encoded = jax.block_until_ready(darnn_encoder(x, params, H))

    # sanity check against a pure-JAX (f32) reference of the PyTorch forward.
    # Tolerance accounts for bf16 MXU operands with f32 accumulation in the
    # kernel (gates, softmax and state updates stay in f32) and the approximate
    # EUP reciprocal in the softmax normalisation.
    iw_ref, ie_ref = ref_forward(x, params, H)
    np.testing.assert_allclose(np.asarray(input_weighted), np.asarray(iw_ref), rtol=2e-2, atol=2e-2)
    np.testing.assert_allclose(np.asarray(input_encoded), np.asarray(ie_ref), rtol=2e-2, atol=2e-2)

    print("KERNEL_OK")
</pallas_src>

<mosaic_0001>
module attributes {stable_mosaic.version = 11 : i64} {
  func.func @darnn_encoder_kernel(%arg0: i32, %arg1: memref<2x8x16xf32, #tpu.memory_space<vmem>>, %arg2: memref<8x1xf32, #tpu.memory_space<vmem>>, %arg3: memref<1x32xf32, #tpu.memory_space<vmem>>, %arg4: memref<1x32xf32, #tpu.memory_space<vmem>>, %arg5: memref<16x128xbf16, #tpu.memory_space<vmem>>, %arg6: memref<32x128xbf16, #tpu.memory_space<vmem>>, %arg7: memref<1x128xf32, #tpu.memory_space<vmem>>, %arg8: memref<1x1xf32, #tpu.memory_space<smem>>, %arg9: memref<2x8x16xf32, #tpu.memory_space<vmem>>, %arg10: memref<2x8x32xf32, #tpu.memory_space<vmem>>) attributes {dimension_semantics = [#tpu.dimension_semantics<parallel>], iteration_bounds = array<i64: 1>, scalar_prefetch = 0 : i64, scratch_operands = 0 : i64, tpu.core_type = #tpu.core_type<tc>, window_params = [{transform_indices = @transform_0, window_bounds = array<i64: 2, 8, 16>}, {pipeline_mode = #tpu.pipeline_mode<synchronous>, transform_indices = @transform_1, window_bounds = array<i64: 8, 1>}, {pipeline_mode = #tpu.pipeline_mode<synchronous>, transform_indices = @transform_2, window_bounds = array<i64: 1, 32>}, {pipeline_mode = #tpu.pipeline_mode<synchronous>, transform_indices = @transform_3, window_bounds = array<i64: 1, 32>}, {pipeline_mode = #tpu.pipeline_mode<synchronous>, transform_indices = @transform_4, window_bounds = array<i64: 16, 128>}, {pipeline_mode = #tpu.pipeline_mode<synchronous>, transform_indices = @transform_5, window_bounds = array<i64: 32, 128>}, {pipeline_mode = #tpu.pipeline_mode<synchronous>, transform_indices = @transform_6, window_bounds = array<i64: 1, 128>}, {transform_indices = @transform_7, window_bounds = array<i64: 1, 1>}, {transform_indices = @transform_8, window_bounds = array<i64: 2, 8, 16>}, {transform_indices = @transform_9, window_bounds = array<i64: 2, 8, 32>}]} {
    %c0 = arith.constant 0 : index
    %c0_0 = arith.constant 0 : index
    %c0_1 = arith.constant 0 : index
    %0 = vector.load %arg1[%c0, %c0_0, %c0_1] : memref<2x8x16xf32, #tpu.memory_space<vmem>>, vector<2x8x16xf32>
    %c0_2 = arith.constant 0 : index
    %c0_3 = arith.constant 0 : index
    %1 = vector.load %arg2[%c0_2, %c0_3] : memref<8x1xf32, #tpu.memory_space<vmem>>, vector<8x1xf32>
    %c0_4 = arith.constant 0 : index
    %c0_5 = arith.constant 0 : index
    %2 = memref.load %arg8[%c0_4, %c0_5] : memref<1x1xf32, #tpu.memory_space<smem>>
    %3 = vector.shape_cast %1 : vector<8x1xf32> to vector<1x8x1xf32>
    %4 = vector.broadcast %3 : vector<1x8x1xf32> to vector<2x8x16xf32>
    %5 = arith.mulf %0, %4 : vector<2x8x16xf32>
    %cst = arith.constant dense<0.000000e+00> : vector<2x16xf32>
    %6 = vector.multi_reduction <add>, %5, %cst [1] : vector<2x8x16xf32> to vector<2x16xf32>
    %7 = vector.broadcast %2 : f32 to vector<2x16xf32>
    %8 = arith.addf %6, %7 : vector<2x16xf32>
    %c0_6 = arith.constant 0 : index
    %c0_7 = arith.constant 0 : index
    %9 = vector.load %arg3[%c0_6, %c0_7] : memref<1x32xf32, #tpu.memory_space<vmem>>, vector<1x32xf32>
    %10 = vector.shape_cast %9 : vector<1x32xf32> to vector<1x32xf32>
    %11 = vector.broadcast %10 : vector<1x32xf32> to vector<2x32xf32>
    %c0_8 = arith.constant 0 : index
    %c0_9 = arith.constant 0 : index
    %12 = vector.load %arg4[%c0_8, %c0_9] : memref<1x32xf32, #tpu.memory_space<vmem>>, vector<1x32xf32>
    %13 = vector.shape_cast %12 : vector<1x32xf32> to vector<1x32xf32>
    %14 = vector.broadcast %13 : vector<1x32xf32> to vector<2x32xf32>
    %c0_10 = arith.constant 0 : index
    %c0_11 = arith.constant 0 : index
    %15 = vector.load %arg7[%c0_10, %c0_11] : memref<1x128xf32, #tpu.memory_space<vmem>>, vector<1x128xf32>
    %16 = vector.shape_cast %15 : vector<1x128xf32> to vector<1x128xf32>
    %17 = vector.broadcast %16 : vector<1x128xf32> to vector<2x128xf32>
    %c0_12 = arith.constant 0 : index
    %c0_13 = arith.constant 0 : index
    %18 = vector.load %arg5[%c0_12, %c0_13] : memref<16x128xbf16, #tpu.memory_space<vmem>>, vector<16x128xbf16>
    %c0_14 = arith.constant 0 : index
    %c0_15 = arith.constant 0 : index
    %19 = vector.load %arg6[%c0_14, %c0_15] : memref<32x128xbf16, #tpu.memory_space<vmem>>, vector<32x128xbf16>
    %cst_16 = arith.constant 0.000000e+00 : f32
    %20 = vector.broadcast %cst_16 : f32 to vector<2x32xf32>
    %cst_17 = arith.constant 0.000000e+00 : f32
    %21 = vector.broadcast %cst_17 : f32 to vector<2x32xf32>
    %22 = arith.mulf %20, %11 : vector<2x32xf32>
    %cst_18 = arith.constant dense<0.000000e+00> : vector<2xf32>
    %23 = vector.multi_reduction <add>, %22, %cst_18 [1] : vector<2x32xf32> to vector<2xf32>
    %24 = vector.shape_cast %23 : vector<2xf32> to vector<2x1xf32>
    %25 = arith.mulf %21, %14 : vector<2x32xf32>
    %cst_19 = arith.constant dense<0.000000e+00> : vector<2xf32>
    %26 = vector.multi_reduction <add>, %25, %cst_19 [1] : vector<2x32xf32> to vector<2xf32>
    %27 = vector.shape_cast %26 : vector<2xf32> to vector<2x1xf32>
    %28 = arith.addf %24, %27 : vector<2x1xf32>
    %29 = vector.broadcast %28 : vector<2x1xf32> to vector<2x16xf32>
    %30 = arith.addf %8, %29 : vector<2x16xf32>
    %cst_20 = arith.constant dense<0xFF800000> : vector<2xf32>
    %31 = vector.multi_reduction <maximumf>, %30, %cst_20 [1] : vector<2x16xf32> to vector<2xf32>
    %32 = vector.shape_cast %31 : vector<2xf32> to vector<2x1xf32>
    %33 = vector.broadcast %32 : vector<2x1xf32> to vector<2x16xf32>
    %34 = arith.subf %30, %33 : vector<2x16xf32>
    %35 = math.exp %34 : vector<2x16xf32>
    %cst_21 = arith.constant dense<0.000000e+00> : vector<2xf32>
    %36 = vector.multi_reduction <add>, %35, %cst_21 [1] : vector<2x16xf32> to vector<2xf32>
    %37 = vector.shape_cast %36 : vector<2xf32> to vector<2x1xf32>
    %38 = tpu.reciprocal %37 {approx = true} : vector<2x1xf32> -> vector<2x1xf32>
    %39 = vector.broadcast %38 : vector<2x1xf32> to vector<2x16xf32>
    %40 = arith.mulf %35, %39 : vector<2x16xf32>
    %41 = vector.extract_strided_slice %0 {offsets = [0, 0, 0], sizes = [2, 1, 16], strides = [1, 1, 1]} : vector<2x8x16xf32> to vector<2x1x16xf32>
    %42 = vector.shape_cast %41 : vector<2x1x16xf32> to vector<2x16xf32>
    %43 = arith.mulf %40, %42 : vector<2x16xf32>
    %44 = arith.truncf %43 : vector<2x16xf32> to vector<2x16xbf16>
    %cst_22 = arith.constant dense<0.000000e+00> : vector<2x128xf32>
    %45 = tpu.matmul %44, %18, %cst_22 {dimension_numbers = #tpu.dot_dimension_numbers<[1], [0], [0], [1], [0, 0, 1, 1], [], []>} : vector<2x16xbf16>, vector<16x128xbf16>, vector<2x128xf32> -> vector<2x128xf32>
    %46 = arith.truncf %20 : vector<2x32xf32> to vector<2x32xbf16>
    %cst_23 = arith.constant dense<0.000000e+00> : vector<2x128xf32>
    %47 = tpu.matmul %46, %19, %cst_23 {dimension_numbers = #tpu.dot_dimension_numbers<[1], [0], [0], [1], [0, 0, 1, 1], [], []>} : vector<2x32xbf16>, vector<32x128xbf16>, vector<2x128xf32> -> vector<2x128xf32>
    %48 = arith.addf %45, %47 : vector<2x128xf32>
    %49 = arith.addf %48, %17 : vector<2x128xf32>
    %50 = vector.extract_strided_slice %49 {offsets = [0, 0], sizes = [2, 32], strides = [1, 1]} : vector<2x128xf32> to vector<2x32xf32>
    %51 = arith.negf %50 : vector<2x32xf32>
    %52 = math.exp %51 : vector<2x32xf32>
    %cst_24 = arith.constant 1.000000e+00 : f32
    %53 = vector.broadcast %cst_24 : f32 to vector<2x32xf32>
    %54 = arith.addf %53, %52 : vector<2x32xf32>
    %55 = arith.divf %53, %54 : vector<2x32xf32>
    %56 = vector.extract_strided_slice %49 {offsets = [0, 32], sizes = [2, 32], strides = [1, 1]} : vector<2x128xf32> to vector<2x32xf32>
    %57 = arith.negf %56 : vector<2x32xf32>
    %58 = math.exp %57 : vector<2x32xf32>
    %cst_25 = arith.constant 1.000000e+00 : f32
    %59 = vector.broadcast %cst_25 : f32 to vector<2x32xf32>
    %60 = arith.addf %59, %58 : vector<2x32xf32>
    %61 = arith.divf %59, %60 : vector<2x32xf32>
    %62 = vector.extract_strided_slice %49 {offsets = [0, 64], sizes = [2, 32], strides = [1, 1]} : vector<2x128xf32> to vector<2x32xf32>
    %63 = math.tanh %62 : vector<2x32xf32>
    %64 = vector.extract_strided_slice %49 {offsets = [0, 96], sizes = [2, 32], strides = [1, 1]} : vector<2x128xf32> to vector<2x32xf32>
    %65 = arith.negf %64 : vector<2x32xf32>
    %66 = math.exp %65 : vector<2x32xf32>
    %cst_26 = arith.constant 1.000000e+00 : f32
    %67 = vector.broadcast %cst_26 : f32 to vector<2x32xf32>
    %68 = arith.addf %67, %66 : vector<2x32xf32>
    %69 = arith.divf %67, %68 : vector<2x32xf32>
    %70 = arith.mulf %61, %21 : vector<2x32xf32>
    %71 = arith.mulf %55, %63 : vector<2x32xf32>
    %72 = arith.addf %70, %71 : vector<2x32xf32>
    %73 = math.tanh %72 : vector<2x32xf32>
    %74 = arith.mulf %69, %73 : vector<2x32xf32>
    %c0_27 = arith.constant 0 : index
    %c0_28 = arith.constant 0 : index
    %c0_29 = arith.constant 0 : index
    %75 = vector.load %arg9[%c0_27, %c0_28, %c0_29] : memref<2x8x16xf32, #tpu.memory_space<vmem>>, vector<2x1x16xf32>
    %76 = vector.shape_cast %75 : vector<2x1x16xf32> to vector<2x16xf32>
    %77 = vector.shape_cast %43 : vector<2x16xf32> to vector<2x1x16xf32>
    tpu.vector_store %arg9[%c0_27, %c0_28, %c0_29], %77 {strides = array<i32>} : memref<2x8x16xf32, #tpu.memory_space<vmem>>, vector<2x1x16xf32>,
    %c0_30 = arith.constant 0 : index
    %c0_31 = arith.constant 0 : index
    %c0_32 = arith.constant 0 : index
    %78 = vector.load %arg10[%c0_30, %c0_31, %c0_32] : memref<2x8x32xf32, #tpu.memory_space<vmem>>, vector<2x1x32xf32>
    %79 = vector.shape_cast %78 : vector<2x1x32xf32> to vector<2x32xf32>
    %80 = vector.shape_cast %74 : vector<2x32xf32> to vector<2x1x32xf32>
    tpu.vector_store %arg10[%c0_30, %c0_31, %c0_32], %80 {strides = array<i32>} : memref<2x8x32xf32, #tpu.memory_space<vmem>>, vector<2x1x32xf32>,
    %81 = arith.mulf %74, %11 : vector<2x32xf32>
    %cst_33 = arith.constant dense<0.000000e+00> : vector<2xf32>
    %82 = vector.multi_reduction <add>, %81, %cst_33 [1] : vector<2x32xf32> to vector<2xf32>
    %83 = vector.shape_cast %82 : vector<2xf32> to vector<2x1xf32>
    %84 = arith.mulf %72, %14 : vector<2x32xf32>
    %cst_34 = arith.constant dense<0.000000e+00> : vector<2xf32>
    %85 = vector.multi_reduction <add>, %84, %cst_34 [1] : vector<2x32xf32> to vector<2xf32>
    %86 = vector.shape_cast %85 : vector<2xf32> to vector<2x1xf32>
    %87 = arith.addf %83, %86 : vector<2x1xf32>
    %88 = vector.broadcast %87 : vector<2x1xf32> to vector<2x16xf32>
    %89 = arith.addf %8, %88 : vector<2x16xf32>
    %cst_35 = arith.constant dense<0xFF800000> : vector<2xf32>
    %90 = vector.multi_reduction <maximumf>, %89, %cst_35 [1] : vector<2x16xf32> to vector<2xf32>
    %91 = vector.shape_cast %90 : vector<2xf32> to vector<2x1xf32>
    %92 = vector.broadcast %91 : vector<2x1xf32> to vector<2x16xf32>
    %93 = arith.subf %89, %92 : vector<2x16xf32>
    %94 = math.exp %93 : vector<2x16xf32>
    %cst_36 = arith.constant dense<0.000000e+00> : vector<2xf32>
    %95 = vector.multi_reduction <add>, %94, %cst_36 [1] : vector<2x16xf32> to vector<2xf32>
    %96 = vector.shape_cast %95 : vector<2xf32> to vector<2x1xf32>
    %97 = tpu.reciprocal %96 {approx = true} : vector<2x1xf32> -> vector<2x1xf32>
    %98 = vector.broadcast %97 : vector<2x1xf32> to vector<2x16xf32>
    %99 = arith.mulf %94, %98 : vector<2x16xf32>
    %100 = vector.extract_strided_slice %0 {offsets = [0, 1, 0], sizes = [2, 1, 16], strides = [1, 1, 1]} : vector<2x8x16xf32> to vector<2x1x16xf32>
    %101 = vector.shape_cast %100 : vector<2x1x16xf32> to vector<2x16xf32>
    %102 = arith.mulf %99, %101 : vector<2x16xf32>
    %103 = arith.truncf %102 : vector<2x16xf32> to vector<2x16xbf16>
    %cst_37 = arith.constant dense<0.000000e+00> : vector<2x128xf32>
    %104 = tpu.matmul %103, %18, %cst_37 {dimension_numbers = #tpu.dot_dimension_numbers<[1], [0], [0], [1], [0, 0, 1, 1], [], []>} : vector<2x16xbf16>, vector<16x128xbf16>, vector<2x128xf32> -> vector<2x128xf32>
    %105 = arith.truncf %74 : vector<2x32xf32> to vector<2x32xbf16>
    %cst_38 = arith.constant dense<0.000000e+00> : vector<2x128xf32>
    %106 = tpu.matmul %105, %19, %cst_38 {dimension_numbers = #tpu.dot_dimension_numbers<[1], [0], [0], [1], [0, 0, 1, 1], [], []>} : vector<2x32xbf16>, vector<32x128xbf16>, vector<2x128xf32> -> vector<2x128xf32>
    %107 = arith.addf %104, %106 : vector<2x128xf32>
    %108 = arith.addf %107, %17 : vector<2x128xf32>
    %109 = vector.extract_strided_slice %108 {offsets = [0, 0], sizes = [2, 32], strides = [1, 1]} : vector<2x128xf32> to vector<2x32xf32>
    %110 = arith.negf %109 : vector<2x32xf32>
    %111 = math.exp %110 : vector<2x32xf32>
    %cst_39 = arith.constant 1.000000e+00 : f32
    %112 = vector.broadcast %cst_39 : f32 to vector<2x32xf32>
    %113 = arith.addf %112, %111 : vector<2x32xf32>
    %114 = arith.divf %112, %113 : vector<2x32xf32>
    %115 = vector.extract_strided_slice %108 {offsets = [0, 32], sizes = [2, 32], strides = [1, 1]} : vector<2x128xf32> to vector<2x32xf32>
    %116 = arith.negf %115 : vector<2x32xf32>
    %117 = math.exp %116 : vector<2x32xf32>
    %cst_40 = arith.constant 1.000000e+00 : f32
    %118 = vector.broadcast %cst_40 : f32 to vector<2x32xf32>
    %119 = arith.addf %118, %117 : vector<2x32xf32>
    %120 = arith.divf %118, %119 : vector<2x32xf32>
    %121 = vector.extract_strided_slice %108 {offsets = [0, 64], sizes = [2, 32], strides = [1, 1]} : vector<2x128xf32> to vector<2x32xf32>
    %122 = math.tanh %121 : vector<2x32xf32>
    %123 = vector.extract_strided_slice %108 {offsets = [0, 96], sizes = [2, 32], strides = [1, 1]} : vector<2x128xf32> to vector<2x32xf32>
    %124 = arith.negf %123 : vector<2x32xf32>
    %125 = math.exp %124 : vector<2x32xf32>
    %cst_41 = arith.constant 1.000000e+00 : f32
    %126 = vector.broadcast %cst_41 : f32 to vector<2x32xf32>
    %127 = arith.addf %126, %125 : vector<2x32xf32>
    %128 = arith.divf %126, %127 : vector<2x32xf32>
    %129 = arith.mulf %120, %72 : vector<2x32xf32>
    %130 = arith.mulf %114, %122 : vector<2x32xf32>
    %131 = arith.addf %129, %130 : vector<2x32xf32>
    %132 = math.tanh %131 : vector<2x32xf32>
    %133 = arith.mulf %128, %132 : vector<2x32xf32>
    %c0_42 = arith.constant 0 : index
    %c1 = arith.constant 1 : index
    %c0_43 = arith.constant 0 : index
    %134 = vector.load %arg9[%c0_42, %c1, %c0_43] : memref<2x8x16xf32, #tpu.memory_space<vmem>>, vector<2x1x16xf32>
    %135 = vector.shape_cast %134 : vector<2x1x16xf32> to vector<2x16xf32>
    %136 = vector.shape_cast %102 : vector<2x16xf32> to vector<2x1x16xf32>
    tpu.vector_store %arg9[%c0_42, %c1, %c0_43], %136 {strides = array<i32>} : memref<2x8x16xf32, #tpu.memory_space<vmem>>, vector<2x1x16xf32>,
    %c0_44 = arith.constant 0 : index
    %c1_45 = arith.constant 1 : index
    %c0_46 = arith.constant 0 : index
    %137 = vector.load %arg10[%c0_44, %c1_45, %c0_46] : memref<2x8x32xf32, #tpu.memory_space<vmem>>, vector<2x1x32xf32>
    %138 = vector.shape_cast %137 : vector<2x1x32xf32> to vector<2x32xf32>
    %139 = vector.shape_cast %133 : vector<2x32xf32> to vector<2x1x32xf32>
    tpu.vector_store %arg10[%c0_44, %c1_45, %c0_46], %139 {strides = array<i32>} : memref<2x8x32xf32, #tpu.memory_space<vmem>>, vector<2x1x32xf32>,
    %140 = arith.mulf %133, %11 : vector<2x32xf32>
    %cst_47 = arith.constant dense<0.000000e+00> : vector<2xf32>
    %141 = vector.multi_reduction <add>, %140, %cst_47 [1] : vector<2x32xf32> to vector<2xf32>
    %142 = vector.shape_cast %141 : vector<2xf32> to vector<2x1xf32>
    %143 = arith.mulf %131, %14 : vector<2x32xf32>
    %cst_48 = arith.constant dense<0.000000e+00> : vector<2xf32>
    %144 = vector.multi_reduction <add>, %143, %cst_48 [1] : vector<2x32xf32> to vector<2xf32>
    %145 = vector.shape_cast %144 : vector<2xf32> to vector<2x1xf32>
    %146 = arith.addf %142, %145 : vector<2x1xf32>
    %147 = vector.broadcast %146 : vector<2x1xf32> to vector<2x16xf32>
    %148 = arith.addf %8, %147 : vector<2x16xf32>
    %cst_49 = arith.constant dense<0xFF800000> : vector<2xf32>
    %149 = vector.multi_reduction <maximumf>, %148, %cst_49 [1] : vector<2x16xf32> to vector<2xf32>
    %150 = vector.shape_cast %149 : vector<2xf32> to vector<2x1xf32>
    %151 = vector.broadcast %150 : vector<2x1xf32> to vector<2x16xf32>
    %152 = arith.subf %148, %151 : vector<2x16xf32>
    %153 = math.exp %152 : vector<2x16xf32>
    %cst_50 = arith.constant dense<0.000000e+00> : vector<2xf32>
    %154 = vector.multi_reduction <add>, %153, %cst_50 [1] : vector<2x16xf32> to vector<2xf32>
    %155 = vector.shape_cast %154 : vector<2xf32> to vector<2x1xf32>
    %156 = tpu.reciprocal %155 {approx = true} : vector<2x1xf32> -> vector<2x1xf32>
    %157 = vector.broadcast %156 : vector<2x1xf32> to vector<2x16xf32>
    %158 = arith.mulf %153, %157 : vector<2x16xf32>
    %159 = vector.extract_strided_slice %0 {offsets = [0, 2, 0], sizes = [2, 1, 16], strides = [1, 1, 1]} : vector<2x8x16xf32> to vector<2x1x16xf32>
    %160 = vector.shape_cast %159 : vector<2x1x16xf32> to vector<2x16xf32>
    %161 = arith.mulf %158, %160 : vector<2x16xf32>
    %162 = arith.truncf %161 : vector<2x16xf32> to vector<2x16xbf16>
    %cst_51 = arith.constant dense<0.000000e+00> : vector<2x128xf32>
    %163 = tpu.matmul %162, %18, %cst_51 {dimension_numbers = #tpu.dot_dimension_numbers<[1], [0], [0], [1], [0, 0, 1, 1], [], []>} : vector<2x16xbf16>, vector<16x128xbf16>, vector<2x128xf32> -> vector<2x128xf32>
    %164 = arith.truncf %133 : vector<2x32xf32> to vector<2x32xbf16>
    %cst_52 = arith.constant dense<0.000000e+00> : vector<2x128xf32>
    %165 = tpu.matmul %164, %19, %cst_52 {dimension_numbers = #tpu.dot_dimension_numbers<[1], [0], [0], [1], [0, 0, 1, 1], [], []>} : vector<2x32xbf16>, vector<32x128xbf16>, vector<2x128xf32> -> vector<2x128xf32>
    %166 = arith.addf %163, %165 : vector<2x128xf32>
    %167 = arith.addf %166, %17 : vector<2x128xf32>
    %168 = vector.extract_strided_slice %167 {offsets = [0, 0], sizes = [2, 32], strides = [1, 1]} : vector<2x128xf32> to vector<2x32xf32>
    %169 = arith.negf %168 : vector<2x32xf32>
    %170 = math.exp %169 : vector<2x32xf32>
    %cst_53 = arith.constant 1.000000e+00 : f32
    %171 = vector.broadcast %cst_53 : f32 to vector<2x32xf32>
    %172 = arith.addf %171, %170 : vector<2x32xf32>
    %173 = arith.divf %171, %172 : vector<2x32xf32>
    %174 = vector.extract_strided_slice %167 {offsets = [0, 32], sizes = [2, 32], strides = [1, 1]} : vector<2x128xf32> to vector<2x32xf32>
    %175 = arith.negf %174 : vector<2x32xf32>
    %176 = math.exp %175 : vector<2x32xf32>
    %cst_54 = arith.constant 1.000000e+00 : f32
    %177 = vector.broadcast %cst_54 : f32 to vector<2x32xf32>
    %178 = arith.addf %177, %176 : vector<2x32xf32>
    %179 = arith.divf %177, %178 : vector<2x32xf32>
    %180 = vector.extract_strided_slice %167 {offsets = [0, 64], sizes = [2, 32], strides = [1, 1]} : vector<2x128xf32> to vector<2x32xf32>
    %181 = math.tanh %180 : vector<2x32xf32>
    %182 = vector.extract_strided_slice %167 {offsets = [0, 96], sizes = [2, 32], strides = [1, 1]} : vector<2x128xf32> to vector<2x32xf32>
    %183 = arith.negf %182 : vector<2x32xf32>
    %184 = math.exp %183 : vector<2x32xf32>
    %cst_55 = arith.constant 1.000000e+00 : f32
    %185 = vector.broadcast %cst_55 : f32 to vector<2x32xf32>
    %186 = arith.addf %185, %184 : vector<2x32xf32>
    %187 = arith.divf %185, %186 : vector<2x32xf32>
    %188 = arith.mulf %179, %131 : vector<2x32xf32>
    %189 = arith.mulf %173, %181 : vector<2x32xf32>
    %190 = arith.addf %188, %189 : vector<2x32xf32>
    %191 = math.tanh %190 : vector<2x32xf32>
    %192 = arith.mulf %187, %191 : vector<2x32xf32>
    %c0_56 = arith.constant 0 : index
    %c2 = arith.constant 2 : index
    %c0_57 = arith.constant 0 : index
    %193 = vector.load %arg9[%c0_56, %c2, %c0_57] : memref<2x8x16xf32, #tpu.memory_space<vmem>>, vector<2x1x16xf32>
    %194 = vector.shape_cast %193 : vector<2x1x16xf32> to vector<2x16xf32>
    %195 = vector.shape_cast %161 : vector<2x16xf32> to vector<2x1x16xf32>
    tpu.vector_store %arg9[%c0_56, %c2, %c0_57], %195 {strides = array<i32>} : memref<2x8x16xf32, #tpu.memory_space<vmem>>, vector<2x1x16xf32>,
    %c0_58 = arith.constant 0 : index
    %c2_59 = arith.constant 2 : index
    %c0_60 = arith.constant 0 : index
    %196 = vector.load %arg10[%c0_58, %c2_59, %c0_60] : memref<2x8x32xf32, #tpu.memory_space<vmem>>, vector<2x1x32xf32>
    %197 = vector.shape_cast %196 : vector<2x1x32xf32> to vector<2x32xf32>
    %198 = vector.shape_cast %192 : vector<2x32xf32> to vector<2x1x32xf32>
    tpu.vector_store %arg10[%c0_58, %c2_59, %c0_60], %198 {strides = array<i32>} : memref<2x8x32xf32, #tpu.memory_space<vmem>>, vector<2x1x32xf32>,
    %199 = arith.mulf %192, %11 : vector<2x32xf32>
    %cst_61 = arith.constant dense<0.000000e+00> : vector<2xf32>
    %200 = vector.multi_reduction <add>, %199, %cst_61 [1] : vector<2x32xf32> to vector<2xf32>
    %201 = vector.shape_cast %200 : vector<2xf32> to vector<2x1xf32>
    %202 = arith.mulf %190, %14 : vector<2x32xf32>
    %cst_62 = arith.constant dense<0.000000e+00> : vector<2xf32>
    %203 = vector.multi_reduction <add>, %202, %cst_62 [1] : vector<2x32xf32> to vector<2xf32>
    %204 = vector.shape_cast %203 : vector<2xf32> to vector<2x1xf32>
    %205 = arith.addf %201, %204 : vector<2x1xf32>
    %206 = vector.broadcast %205 : vector<2x1xf32> to vector<2x16xf32>
    %207 = arith.addf %8, %206 : vector<2x16xf32>
    %cst_63 = arith.constant dense<0xFF800000> : vector<2xf32>
    %208 = vector.multi_reduction <maximumf>, %207, %cst_63 [1] : vector<2x16xf32> to vector<2xf32>
    %209 = vector.shape_cast %208 : vector<2xf32> to vector<2x1xf32>
    %210 = vector.broadcast %209 : vector<2x1xf32> to vector<2x16xf32>
    %211 = arith.subf %207, %210 : vector<2x16xf32>
    %212 = math.exp %211 : vector<2x16xf32>
    %cst_64 = arith.constant dense<0.000000e+00> : vector<2xf32>
    %213 = vector.multi_reduction <add>, %212, %cst_64 [1] : vector<2x16xf32> to vector<2xf32>
    %214 = vector.shape_cast %213 : vector<2xf32> to vector<2x1xf32>
    %215 = tpu.reciprocal %214 {approx = true} : vector<2x1xf32> -> vector<2x1xf32>
    %216 = vector.broadcast %215 : vector<2x1xf32> to vector<2x16xf32>
    %217 = arith.mulf %212, %216 : vector<2x16xf32>
    %218 = vector.extract_strided_slice %0 {offsets = [0, 3, 0], sizes = [2, 1, 16], strides = [1, 1, 1]} : vector<2x8x16xf32> to vector<2x1x16xf32>
    %219 = vector.shape_cast %218 : vector<2x1x16xf32> to vector<2x16xf32>
    %220 = arith.mulf %217, %219 : vector<2x16xf32>
    %221 = arith.truncf %220 : vector<2x16xf32> to vector<2x16xbf16>
    %cst_65 = arith.constant dense<0.000000e+00> : vector<2x128xf32>
    %222 = tpu.matmul %221, %18, %cst_65 {dimension_numbers = #tpu.dot_dimension_numbers<[1], [0], [0], [1], [0, 0, 1, 1], [], []>} : vector<2x16xbf16>, vector<16x128xbf16>, vector<2x128xf32> -> vector<2x128xf32>
    %223 = arith.truncf %192 : vector<2x32xf32> to vector<2x32xbf16>
    %cst_66 = arith.constant dense<0.000000e+00> : vector<2x128xf32>
    %224 = tpu.matmul %223, %19, %cst_66 {dimension_numbers = #tpu.dot_dimension_numbers<[1], [0], [0], [1], [0, 0, 1, 1], [], []>} : vector<2x32xbf16>, vector<32x128xbf16>, vector<2x128xf32> -> vector<2x128xf32>
    %225 = arith.addf %222, %224 : vector<2x128xf32>
    %226 = arith.addf %225, %17 : vector<2x128xf32>
    %227 = vector.extract_strided_slice %226 {offsets = [0, 0], sizes = [2, 32], strides = [1, 1]} : vector<2x128xf32> to vector<2x32xf32>
    %228 = arith.negf %227 : vector<2x32xf32>
    %229 = math.exp %228 : vector<2x32xf32>
    %cst_67 = arith.constant 1.000000e+00 : f32
    %230 = vector.broadcast %cst_67 : f32 to vector<2x32xf32>
    %231 = arith.addf %230, %229 : vector<2x32xf32>
    %232 = arith.divf %230, %231 : vector<2x32xf32>
    %233 = vector.extract_strided_slice %226 {offsets = [0, 32], sizes = [2, 32], strides = [1, 1]} : vector<2x128xf32> to vector<2x32xf32>
    %234 = arith.negf %233 : vector<2x32xf32>
    %235 = math.exp %234 : vector<2x32xf32>
    %cst_68 = arith.constant 1.000000e+00 : f32
    %236 = vector.broadcast %cst_68 : f32 to vector<2x32xf32>
    %237 = arith.addf %236, %235 : vector<2x32xf32>
    %238 = arith.divf %236, %237 : vector<2x32xf32>
    %239 = vector.extract_strided_slice %226 {offsets = [0, 64], sizes = [2, 32], strides = [1, 1]} : vector<2x128xf32> to vector<2x32xf32>
    %240 = math.tanh %239 : vector<2x32xf32>
    %241 = vector.extract_strided_slice %226 {offsets = [0, 96], sizes = [2, 32], strides = [1, 1]} : vector<2x128xf32> to vector<2x32xf32>
    %242 = arith.negf %241 : vector<2x32xf32>
    %243 = math.exp %242 : vector<2x32xf32>
    %cst_69 = arith.constant 1.000000e+00 : f32
    %244 = vector.broadcast %cst_69 : f32 to vector<2x32xf32>
    %245 = arith.addf %244, %243 : vector<2x32xf32>
    %246 = arith.divf %244, %245 : vector<2x32xf32>
    %247 = arith.mulf %238, %190 : vector<2x32xf32>
    %248 = arith.mulf %232, %240 : vector<2x32xf32>
    %249 = arith.addf %247, %248 : vector<2x32xf32>
    %250 = math.tanh %249 : vector<2x32xf32>
    %251 = arith.mulf %246, %250 : vector<2x32xf32>
    %c0_70 = arith.constant 0 : index
    %c3 = arith.constant 3 : index
    %c0_71 = arith.constant 0 : index
    %252 = vector.load %arg9[%c0_70, %c3, %c0_71] : memref<2x8x16xf32, #tpu.memory_space<vmem>>, vector<2x1x16xf32>
    %253 = vector.shape_cast %252 : vector<2x1x16xf32> to vector<2x16xf32>
    %254 = vector.shape_cast %220 : vector<2x16xf32> to vector<2x1x16xf32>
    tpu.vector_store %arg9[%c0_70, %c3, %c0_71], %254 {strides = array<i32>} : memref<2x8x16xf32, #tpu.memory_space<vmem>>, vector<2x1x16xf32>,
    %c0_72 = arith.constant 0 : index
    %c3_73 = arith.constant 3 : index
    %c0_74 = arith.constant 0 : index
    %255 = vector.load %arg10[%c0_72, %c3_73, %c0_74] : memref<2x8x32xf32, #tpu.memory_space<vmem>>, vector<2x1x32xf32>
    %256 = vector.shape_cast %255 : vector<2x1x32xf32> to vector<2x32xf32>
    %257 = vector.shape_cast %251 : vector<2x32xf32> to vector<2x1x32xf32>
    tpu.vector_store %arg10[%c0_72, %c3_73, %c0_74], %257 {strides = array<i32>} : memref<2x8x32xf32, #tpu.memory_space<vmem>>, vector<2x1x32xf32>,
    %258 = arith.mulf %251, %11 : vector<2x32xf32>
    %cst_75 = arith.constant dense<0.000000e+00> : vector<2xf32>
    %259 = vector.multi_reduction <add>, %258, %cst_75 [1] : vector<2x32xf32> to vector<2xf32>
    %260 = vector.shape_cast %259 : vector<2xf32> to vector<2x1xf32>
    %261 = arith.mulf %249, %14 : vector<2x32xf32>
    %cst_76 = arith.constant dense<0.000000e+00> : vector<2xf32>
    %262 = vector.multi_reduction <add>, %261, %cst_76 [1] : vector<2x32xf32> to vector<2xf32>
    %263 = vector.shape_cast %262 : vector<2xf32> to vector<2x1xf32>
    %264 = arith.addf %260, %263 : vector<2x1xf32>
    %265 = vector.broadcast %264 : vector<2x1xf32> to vector<2x16xf32>
    %266 = arith.addf %8, %265 : vector<2x16xf32>
    %cst_77 = arith.constant dense<0xFF800000> : vector<2xf32>
    %267 = vector.multi_reduction <maximumf>, %266, %cst_77 [1] : vector<2x16xf32> to vector<2xf32>
    %268 = vector.shape_cast %267 : vector<2xf32> to vector<2x1xf32>
    %269 = vector.broadcast %268 : vector<2x1xf32> to vector<2x16xf32>
    %270 = arith.subf %266, %269 : vector<2x16xf32>
    %271 = math.exp %270 : vector<2x16xf32>
    %cst_78 = arith.constant dense<0.000000e+00> : vector<2xf32>
    %272 = vector.multi_reduction <add>, %271, %cst_78 [1] : vector<2x16xf32> to vector<2xf32>
    %273 = vector.shape_cast %272 : vector<2xf32> to vector<2x1xf32>
    %274 = tpu.reciprocal %273 {approx = true} : vector<2x1xf32> -> vector<2x1xf32>
    %275 = vector.broadcast %274 : vector<2x1xf32> to vector<2x16xf32>
    %276 = arith.mulf %271, %275 : vector<2x16xf32>
    %277 = vector.extract_strided_slice %0 {offsets = [0, 4, 0], sizes = [2, 1, 16], strides = [1, 1, 1]} : vector<2x8x16xf32> to vector<2x1x16xf32>
    %278 = vector.shape_cast %277 : vector<2x1x16xf32> to vector<2x16xf32>
    %279 = arith.mulf %276, %278 : vector<2x16xf32>
    %280 = arith.truncf %279 : vector<2x16xf32> to vector<2x16xbf16>
    %cst_79 = arith.constant dense<0.000000e+00> : vector<2x128xf32>
    %281 = tpu.matmul %280, %18, %cst_79 {dimension_numbers = #tpu.dot_dimension_numbers<[1], [0], [0], [1], [0, 0, 1, 1], [], []>} : vector<2x16xbf16>, vector<16x128xbf16>, vector<2x128xf32> -> vector<2x128xf32>
    %282 = arith.truncf %251 : vector<2x32xf32> to vector<2x32xbf16>
    %cst_80 = arith.constant dense<0.000000e+00> : vector<2x128xf32>
    %283 = tpu.matmul %282, %19, %cst_80 {dimension_numbers = #tpu.dot_dimension_numbers<[1], [0], [0], [1], [0, 0, 1, 1], [], []>} : vector<2x32xbf16>, vector<32x128xbf16>, vector<2x128xf32> -> vector<2x128xf32>
    %284 = arith.addf %281, %283 : vector<2x128xf32>
    %285 = arith.addf %284, %17 : vector<2x128xf32>
    %286 = vector.extract_strided_slice %285 {offsets = [0, 0], sizes = [2, 32], strides = [1, 1]} : vector<2x128xf32> to vector<2x32xf32>
    %287 = arith.negf %286 : vector<2x32xf32>
    %288 = math.exp %287 : vector<2x32xf32>
    %cst_81 = arith.constant 1.000000e+00 : f32
    %289 = vector.broadcast %cst_81 : f32 to vector<2x32xf32>
    %290 = arith.addf %289, %288 : vector<2x32xf32>
    %291 = arith.divf %289, %290 : vector<2x32xf32>
    %292 = vector.extract_strided_slice %285 {offsets = [0, 32], sizes = [2, 32], strides = [1, 1]} : vector<2x128xf32> to vector<2x32xf32>
    %293 = arith.negf %292 : vector<2x32xf32>
    %294 = math.exp %293 : vector<2x32xf32>
    %cst_82 = arith.constant 1.000000e+00 : f32
    %295 = vector.broadcast %cst_82 : f32 to vector<2x32xf32>
    %296 = arith.addf %295, %294 : vector<2x32xf32>
    %297 = arith.divf %295, %296 : vector<2x32xf32>
    %298 = vector.extract_strided_slice %285 {offsets = [0, 64], sizes = [2, 32], strides = [1, 1]} : vector<2x128xf32> to vector<2x32xf32>
    %299 = math.tanh %298 : vector<2x32xf32>
    %300 = vector.extract_strided_slice %285 {offsets = [0, 96], sizes = [2, 32], strides = [1, 1]} : vector<2x128xf32> to vector<2x32xf32>
    %301 = arith.negf %300 : vector<2x32xf32>
    %302 = math.exp %301 : vector<2x32xf32>
    %cst_83 = arith.constant 1.000000e+00 : f32
    %303 = vector.broadcast %cst_83 : f32 to vector<2x32xf32>
    %304 = arith.addf %303, %302 : vector<2x32xf32>
    %305 = arith.divf %303, %304 : vector<2x32xf32>
    %306 = arith.mulf %297, %249 : vector<2x32xf32>
    %307 = arith.mulf %291, %299 : vector<2x32xf32>
    %308 = arith.addf %306, %307 : vector<2x32xf32>
    %309 = math.tanh %308 : vector<2x32xf32>
    %310 = arith.mulf %305, %309 : vector<2x32xf32>
    %c0_84 = arith.constant 0 : index
    %c4 = arith.constant 4 : index
    %c0_85 = arith.constant 0 : index
    %311 = vector.load %arg9[%c0_84, %c4, %c0_85] : memref<2x8x16xf32, #tpu.memory_space<vmem>>, vector<2x1x16xf32>
    %312 = vector.shape_cast %311 : vector<2x1x16xf32> to vector<2x16xf32>
    %313 = vector.shape_cast %279 : vector<2x16xf32> to vector<2x1x16xf32>
    tpu.vector_store %arg9[%c0_84, %c4, %c0_85], %313 {strides = array<i32>} : memref<2x8x16xf32, #tpu.memory_space<vmem>>, vector<2x1x16xf32>,
    %c0_86 = arith.constant 0 : index
    %c4_87 = arith.constant 4 : index
    %c0_88 = arith.constant 0 : index
    %314 = vector.load %arg10[%c0_86, %c4_87, %c0_88] : memref<2x8x32xf32, #tpu.memory_space<vmem>>, vector<2x1x32xf32>
    %315 = vector.shape_cast %314 : vector<2x1x32xf32> to vector<2x32xf32>
    %316 = vector.shape_cast %310 : vector<2x32xf32> to vector<2x1x32xf32>
    tpu.vector_store %arg10[%c0_86, %c4_87, %c0_88], %316 {strides = array<i32>} : memref<2x8x32xf32, #tpu.memory_space<vmem>>, vector<2x1x32xf32>,
    %317 = arith.mulf %310, %11 : vector<2x32xf32>
    %cst_89 = arith.constant dense<0.000000e+00> : vector<2xf32>
    %318 = vector.multi_reduction <add>, %317, %cst_89 [1] : vector<2x32xf32> to vector<2xf32>
    %319 = vector.shape_cast %318 : vector<2xf32> to vector<2x1xf32>
    %320 = arith.mulf %308, %14 : vector<2x32xf32>
    %cst_90 = arith.constant dense<0.000000e+00> : vector<2xf32>
    %321 = vector.multi_reduction <add>, %320, %cst_90 [1] : vector<2x32xf32> to vector<2xf32>
    %322 = vector.shape_cast %321 : vector<2xf32> to vector<2x1xf32>
    %323 = arith.addf %319, %322 : vector<2x1xf32>
    %324 = vector.broadcast %323 : vector<2x1xf32> to vector<2x16xf32>
    %325 = arith.addf %8, %324 : vector<2x16xf32>
    %cst_91 = arith.constant dense<0xFF800000> : vector<2xf32>
    %326 = vector.multi_reduction <maximumf>, %325, %cst_91 [1] : vector<2x16xf32> to vector<2xf32>
    %327 = vector.shape_cast %326 : vector<2xf32> to vector<2x1xf32>
    %328 = vector.broadcast %327 : vector<2x1xf32> to vector<2x16xf32>
    %329 = arith.subf %325, %328 : vector<2x16xf32>
    %330 = math.exp %329 : vector<2x16xf32>
    %cst_92 = arith.constant dense<0.000000e+00> : vector<2xf32>
    %331 = vector.multi_reduction <add>, %330, %cst_92 [1] : vector<2x16xf32> to vector<2xf32>
    %332 = vector.shape_cast %331 : vector<2xf32> to vector<2x1xf32>
    %333 = tpu.reciprocal %332 {approx = true} : vector<2x1xf32> -> vector<2x1xf32>
    %334 = vector.broadcast %333 : vector<2x1xf32> to vector<2x16xf32>
    %335 = arith.mulf %330, %334 : vector<2x16xf32>
    %336 = vector.extract_strided_slice %0 {offsets = [0, 5, 0], sizes = [2, 1, 16], strides = [1, 1, 1]} : vector<2x8x16xf32> to vector<2x1x16xf32>
    %337 = vector.shape_cast %336 : vector<2x1x16xf32> to vector<2x16xf32>
    %338 = arith.mulf %335, %337 : vector<2x16xf32>
    %339 = arith.truncf %338 : vector<2x16xf32> to vector<2x16xbf16>
    %cst_93 = arith.constant dense<0.000000e+00> : vector<2x128xf32>
    %340 = tpu.matmul %339, %18, %cst_93 {dimension_numbers = #tpu.dot_dimension_numbers<[1], [0], [0], [1], [0, 0, 1, 1], [], []>} : vector<2x16xbf16>, vector<16x128xbf16>, vector<2x128xf32> -> vector<2x128xf32>
    %341 = arith.truncf %310 : vector<2x32xf32> to vector<2x32xbf16>
    %cst_94 = arith.constant dense<0.000000e+00> : vector<2x128xf32>
    %342 = tpu.matmul %341, %19, %cst_94 {dimension_numbers = #tpu.dot_dimension_numbers<[1], [0], [0], [1], [0, 0, 1, 1], [], []>} : vector<2x32xbf16>, vector<32x128xbf16>, vector<2x128xf32> -> vector<2x128xf32>
    %343 = arith.addf %340, %342 : vector<2x128xf32>
    %344 = arith.addf %343, %17 : vector<2x128xf32>
    %345 = vector.extract_strided_slice %344 {offsets = [0, 0], sizes = [2, 32], strides = [1, 1]} : vector<2x128xf32> to vector<2x32xf32>
    %346 = arith.negf %345 : vector<2x32xf32>
    %347 = math.exp %346 : vector<2x32xf32>
    %cst_95 = arith.constant 1.000000e+00 : f32
    %348 = vector.broadcast %cst_95 : f32 to vector<2x32xf32>
    %349 = arith.addf %348, %347 : vector<2x32xf32>
    %350 = arith.divf %348, %349 : vector<2x32xf32>
    %351 = vector.extract_strided_slice %344 {offsets = [0, 32], sizes = [2, 32], strides = [1, 1]} : vector<2x128xf32> to vector<2x32xf32>
    %352 = arith.negf %351 : vector<2x32xf32>
    %353 = math.exp %352 : vector<2x32xf32>
    %cst_96 = arith.constant 1.000000e+00 : f32
    %354 = vector.broadcast %cst_96 : f32 to vector<2x32xf32>
    %355 = arith.addf %354, %353 : vector<2x32xf32>
    %356 = arith.divf %354, %355 : vector<2x32xf32>
    %357 = vector.extract_strided_slice %344 {offsets = [0, 64], sizes = [2, 32], strides = [1, 1]} : vector<2x128xf32> to vector<2x32xf32>
    %358 = math.tanh %357 : vector<2x32xf32>
    %359 = vector.extract_strided_slice %344 {offsets = [0, 96], sizes = [2, 32], strides = [1, 1]} : vector<2x128xf32> to vector<2x32xf32>
    %360 = arith.negf %359 : vector<2x32xf32>
    %361 = math.exp %360 : vector<2x32xf32>
    %cst_97 = arith.constant 1.000000e+00 : f32
    %362 = vector.broadcast %cst_97 : f32 to vector<2x32xf32>
    %363 = arith.addf %362, %361 : vector<2x32xf32>
    %364 = arith.divf %362, %363 : vector<2x32xf32>
    %365 = arith.mulf %356, %308 : vector<2x32xf32>
    %366 = arith.mulf %350, %358 : vector<2x32xf32>
    %367 = arith.addf %365, %366 : vector<2x32xf32>
    %368 = math.tanh %367 : vector<2x32xf32>
    %369 = arith.mulf %364, %368 : vector<2x32xf32>
    %c0_98 = arith.constant 0 : index
    %c5 = arith.constant 5 : index
    %c0_99 = arith.constant 0 : index
    %370 = vector.load %arg9[%c0_98, %c5, %c0_99] : memref<2x8x16xf32, #tpu.memory_space<vmem>>, vector<2x1x16xf32>
    %371 = vector.shape_cast %370 : vector<2x1x16xf32> to vector<2x16xf32>
    %372 = vector.shape_cast %338 : vector<2x16xf32> to vector<2x1x16xf32>
    tpu.vector_store %arg9[%c0_98, %c5, %c0_99], %372 {strides = array<i32>} : memref<2x8x16xf32, #tpu.memory_space<vmem>>, vector<2x1x16xf32>,
    %c0_100 = arith.constant 0 : index
    %c5_101 = arith.constant 5 : index
    %c0_102 = arith.constant 0 : index
    %373 = vector.load %arg10[%c0_100, %c5_101, %c0_102] : memref<2x8x32xf32, #tpu.memory_space<vmem>>, vector<2x1x32xf32>
    %374 = vector.shape_cast %373 : vector<2x1x32xf32> to vector<2x32xf32>
    %375 = vector.shape_cast %369 : vector<2x32xf32> to vector<2x1x32xf32>
    tpu.vector_store %arg10[%c0_100, %c5_101, %c0_102], %375 {strides = array<i32>} : memref<2x8x32xf32, #tpu.memory_space<vmem>>, vector<2x1x32xf32>,
    %376 = arith.mulf %369, %11 : vector<2x32xf32>
    %cst_103 = arith.constant dense<0.000000e+00> : vector<2xf32>
    %377 = vector.multi_reduction <add>, %376, %cst_103 [1] : vector<2x32xf32> to vector<2xf32>
    %378 = vector.shape_cast %377 : vector<2xf32> to vector<2x1xf32>
    %379 = arith.mulf %367, %14 : vector<2x32xf32>
    %cst_104 = arith.constant dense<0.000000e+00> : vector<2xf32>
    %380 = vector.multi_reduction <add>, %379, %cst_104 [1] : vector<2x32xf32> to vector<2xf32>
    %381 = vector.shape_cast %380 : vector<2xf32> to vector<2x1xf32>
    %382 = arith.addf %378, %381 : vector<2x1xf32>
    %383 = vector.broadcast %382 : vector<2x1xf32> to vector<2x16xf32>
    %384 = arith.addf %8, %383 : vector<2x16xf32>
    %cst_105 = arith.constant dense<0xFF800000> : vector<2xf32>
    %385 = vector.multi_reduction <maximumf>, %384, %cst_105 [1] : vector<2x16xf32> to vector<2xf32>
    %386 = vector.shape_cast %385 : vector<2xf32> to vector<2x1xf32>
    %387 = vector.broadcast %386 : vector<2x1xf32> to vector<2x16xf32>
    %388 = arith.subf %384, %387 : vector<2x16xf32>
    %389 = math.exp %388 : vector<2x16xf32>
    %cst_106 = arith.constant dense<0.000000e+00> : vector<2xf32>
    %390 = vector.multi_reduction <add>, %389, %cst_106 [1] : vector<2x16xf32> to vector<2xf32>
    %391 = vector.shape_cast %390 : vector<2xf32> to vector<2x1xf32>
    %392 = tpu.reciprocal %391 {approx = true} : vector<2x1xf32> -> vector<2x1xf32>
    %393 = vector.broadcast %392 : vector<2x1xf32> to vector<2x16xf32>
    %394 = arith.mulf %389, %393 : vector<2x16xf32>
    %395 = vector.extract_strided_slice %0 {offsets = [0, 6, 0], sizes = [2, 1, 16], strides = [1, 1, 1]} : vector<2x8x16xf32> to vector<2x1x16xf32>
    %396 = vector.shape_cast %395 : vector<2x1x16xf32> to vector<2x16xf32>
    %397 = arith.mulf %394, %396 : vector<2x16xf32>
    %398 = arith.truncf %397 : vector<2x16xf32> to vector<2x16xbf16>
    %cst_107 = arith.constant dense<0.000000e+00> : vector<2x128xf32>
    %399 = tpu.matmul %398, %18, %cst_107 {dimension_numbers = #tpu.dot_dimension_numbers<[1], [0], [0], [1], [0, 0, 1, 1], [], []>} : vector<2x16xbf16>, vector<16x128xbf16>, vector<2x128xf32> -> vector<2x128xf32>
    %400 = arith.truncf %369 : vector<2x32xf32> to vector<2x32xbf16>
    %cst_108 = arith.constant dense<0.000000e+00> : vector<2x128xf32>
    %401 = tpu.matmul %400, %19, %cst_108 {dimension_numbers = #tpu.dot_dimension_numbers<[1], [0], [0], [1], [0, 0, 1, 1], [], []>} : vector<2x32xbf16>, vector<32x128xbf16>, vector<2x128xf32> -> vector<2x128xf32>
    %402 = arith.addf %399, %401 : vector<2x128xf32>
    %403 = arith.addf %402, %17 : vector<2x128xf32>
    %404 = vector.extract_strided_slice %403 {offsets = [0, 0], sizes = [2, 32], strides = [1, 1]} : vector<2x128xf32> to vector<2x32xf32>
    %405 = arith.negf %404 : vector<2x32xf32>
    %406 = math.exp %405 : vector<2x32xf32>
    %cst_109 = arith.constant 1.000000e+00 : f32
    %407 = vector.broadcast %cst_109 : f32 to vector<2x32xf32>
    %408 = arith.addf %407, %406 : vector<2x32xf32>
    %409 = arith.divf %407, %408 : vector<2x32xf32>
    %410 = vector.extract_strided_slice %403 {offsets = [0, 32], sizes = [2, 32], strides = [1, 1]} : vector<2x128xf32> to vector<2x32xf32>
    %411 = arith.negf %410 : vector<2x32xf32>
    %412 = math.exp %411 : vector<2x32xf32>
    %cst_110 = arith.constant 1.000000e+00 : f32
    %413 = vector.broadcast %cst_110 : f32 to vector<2x32xf32>
    %414 = arith.addf %413, %412 : vector<2x32xf32>
    %415 = arith.divf %413, %414 : vector<2x32xf32>
    %416 = vector.extract_strided_slice %403 {offsets = [0, 64], sizes = [2, 32], strides = [1, 1]} : vector<2x128xf32> to vector<2x32xf32>
    %417 = math.tanh %416 : vector<2x32xf32>
    %418 = vector.extract_strided_slice %403 {offsets = [0, 96], sizes = [2, 32], strides = [1, 1]} : vector<2x128xf32> to vector<2x32xf32>
    %419 = arith.negf %418 : vector<2x32xf32>
    %420 = math.exp %419 : vector<2x32xf32>
    %cst_111 = arith.constant 1.000000e+00 : f32
    %421 = vector.broadcast %cst_111 : f32 to vector<2x32xf32>
    %422 = arith.addf %421, %420 : vector<2x32xf32>
    %423 = arith.divf %421, %422 : vector<2x32xf32>
    %424 = arith.mulf %415, %367 : vector<2x32xf32>
    %425 = arith.mulf %409, %417 : vector<2x32xf32>
    %426 = arith.addf %424, %425 : vector<2x32xf32>
    %427 = math.tanh %426 : vector<2x32xf32>
    %428 = arith.mulf %423, %427 : vector<2x32xf32>
    %c0_112 = arith.constant 0 : index
    %c6 = arith.constant 6 : index
    %c0_113 = arith.constant 0 : index
    %429 = vector.load %arg9[%c0_112, %c6, %c0_113] : memref<2x8x16xf32, #tpu.memory_space<vmem>>, vector<2x1x16xf32>
    %430 = vector.shape_cast %429 : vector<2x1x16xf32> to vector<2x16xf32>
    %431 = vector.shape_cast %397 : vector<2x16xf32> to vector<2x1x16xf32>
    tpu.vector_store %arg9[%c0_112, %c6, %c0_113], %431 {strides = array<i32>} : memref<2x8x16xf32, #tpu.memory_space<vmem>>, vector<2x1x16xf32>,
    %c0_114 = arith.constant 0 : index
    %c6_115 = arith.constant 6 : index
    %c0_116 = arith.constant 0 : index
    %432 = vector.load %arg10[%c0_114, %c6_115, %c0_116] : memref<2x8x32xf32, #tpu.memory_space<vmem>>, vector<2x1x32xf32>
    %433 = vector.shape_cast %432 : vector<2x1x32xf32> to vector<2x32xf32>
    %434 = vector.shape_cast %428 : vector<2x32xf32> to vector<2x1x32xf32>
    tpu.vector_store %arg10[%c0_114, %c6_115, %c0_116], %434 {strides = array<i32>} : memref<2x8x32xf32, #tpu.memory_space<vmem>>, vector<2x1x32xf32>,
    %435 = arith.mulf %428, %11 : vector<2x32xf32>
    %cst_117 = arith.constant dense<0.000000e+00> : vector<2xf32>
    %436 = vector.multi_reduction <add>, %435, %cst_117 [1] : vector<2x32xf32> to vector<2xf32>
    %437 = vector.shape_cast %436 : vector<2xf32> to vector<2x1xf32>
    %438 = arith.mulf %426, %14 : vector<2x32xf32>
    %cst_118 = arith.constant dense<0.000000e+00> : vector<2xf32>
    %439 = vector.multi_reduction <add>, %438, %cst_118 [1] : vector<2x32xf32> to vector<2xf32>
    %440 = vector.shape_cast %439 : vector<2xf32> to vector<2x1xf32>
    %441 = arith.addf %437, %440 : vector<2x1xf32>
    %442 = vector.broadcast %441 : vector<2x1xf32> to vector<2x16xf32>
    %443 = arith.addf %8, %442 : vector<2x16xf32>
    %cst_119 = arith.constant dense<0xFF800000> : vector<2xf32>
    %444 = vector.multi_reduction <maximumf>, %443, %cst_119 [1] : vector<2x16xf32> to vector<2xf32>
    %445 = vector.shape_cast %444 : vector<2xf32> to vector<2x1xf32>
    %446 = vector.broadcast %445 : vector<2x1xf32> to vector<2x16xf32>
    %447 = arith.subf %443, %446 : vector<2x16xf32>
    %448 = math.exp %447 : vector<2x16xf32>
    %cst_120 = arith.constant dense<0.000000e+00> : vector<2xf32>
    %449 = vector.multi_reduction <add>, %448, %cst_120 [1] : vector<2x16xf32> to vector<2xf32>
    %450 = vector.shape_cast %449 : vector<2xf32> to vector<2x1xf32>
    %451 = tpu.reciprocal %450 {approx = true} : vector<2x1xf32> -> vector<2x1xf32>
    %452 = vector.broadcast %451 : vector<2x1xf32> to vector<2x16xf32>
    %453 = arith.mulf %448, %452 : vector<2x16xf32>
    %454 = vector.extract_strided_slice %0 {offsets = [0, 7, 0], sizes = [2, 1, 16], strides = [1, 1, 1]} : vector<2x8x16xf32> to vector<2x1x16xf32>
    %455 = vector.shape_cast %454 : vector<2x1x16xf32> to vector<2x16xf32>
    %456 = arith.mulf %453, %455 : vector<2x16xf32>
    %457 = arith.truncf %456 : vector<2x16xf32> to vector<2x16xbf16>
    %cst_121 = arith.constant dense<0.000000e+00> : vector<2x128xf32>
    %458 = tpu.matmul %457, %18, %cst_121 {dimension_numbers = #tpu.dot_dimension_numbers<[1], [0], [0], [1], [0, 0, 1, 1], [], []>} : vector<2x16xbf16>, vector<16x128xbf16>, vector<2x128xf32> -> vector<2x128xf32>
    %459 = arith.truncf %428 : vector<2x32xf32> to vector<2x32xbf16>
    %cst_122 = arith.constant dense<0.000000e+00> : vector<2x128xf32>
    %460 = tpu.matmul %459, %19, %cst_122 {dimension_numbers = #tpu.dot_dimension_numbers<[1], [0], [0], [1], [0, 0, 1, 1], [], []>} : vector<2x32xbf16>, vector<32x128xbf16>, vector<2x128xf32> -> vector<2x128xf32>
    %461 = arith.addf %458, %460 : vector<2x128xf32>
    %462 = arith.addf %461, %17 : vector<2x128xf32>
    %463 = vector.extract_strided_slice %462 {offsets = [0, 0], sizes = [2, 32], strides = [1, 1]} : vector<2x128xf32> to vector<2x32xf32>
    %464 = arith.negf %463 : vector<2x32xf32>
    %465 = math.exp %464 : vector<2x32xf32>
    %cst_123 = arith.constant 1.000000e+00 : f32
    %466 = vector.broadcast %cst_123 : f32 to vector<2x32xf32>
    %467 = arith.addf %466, %465 : vector<2x32xf32>
    %468 = arith.divf %466, %467 : vector<2x32xf32>
    %469 = vector.extract_strided_slice %462 {offsets = [0, 32], sizes = [2, 32], strides = [1, 1]} : vector<2x128xf32> to vector<2x32xf32>
    %470 = arith.negf %469 : vector<2x32xf32>
    %471 = math.exp %470 : vector<2x32xf32>
    %cst_124 = arith.constant 1.000000e+00 : f32
    %472 = vector.broadcast %cst_124 : f32 to vector<2x32xf32>
    %473 = arith.addf %472, %471 : vector<2x32xf32>
    %474 = arith.divf %472, %473 : vector<2x32xf32>
    %475 = vector.extract_strided_slice %462 {offsets = [0, 64], sizes = [2, 32], strides = [1, 1]} : vector<2x128xf32> to vector<2x32xf32>
    %476 = math.tanh %475 : vector<2x32xf32>
    %477 = vector.extract_strided_slice %462 {offsets = [0, 96], sizes = [2, 32], strides = [1, 1]} : vector<2x128xf32> to vector<2x32xf32>
    %478 = arith.negf %477 : vector<2x32xf32>
    %479 = math.exp %478 : vector<2x32xf32>
    %cst_125 = arith.constant 1.000000e+00 : f32
    %480 = vector.broadcast %cst_125 : f32 to vector<2x32xf32>
    %481 = arith.addf %480, %479 : vector<2x32xf32>
    %482 = arith.divf %480, %481 : vector<2x32xf32>
    %483 = arith.mulf %474, %426 : vector<2x32xf32>
    %484 = arith.mulf %468, %476 : vector<2x32xf32>
    %485 = arith.addf %483, %484 : vector<2x32xf32>
    %486 = math.tanh %485 : vector<2x32xf32>
    %487 = arith.mulf %482, %486 : vector<2x32xf32>
    %c0_126 = arith.constant 0 : index
    %c7 = arith.constant 7 : index
    %c0_127 = arith.constant 0 : index
    %488 = vector.load %arg9[%c0_126, %c7, %c0_127] : memref<2x8x16xf32, #tpu.memory_space<vmem>>, vector<2x1x16xf32>
    %489 = vector.shape_cast %488 : vector<2x1x16xf32> to vector<2x16xf32>
    %490 = vector.shape_cast %456 : vector<2x16xf32> to vector<2x1x16xf32>
    tpu.vector_store %arg9[%c0_126, %c7, %c0_127], %490 {strides = array<i32>} : memref<2x8x16xf32, #tpu.memory_space<vmem>>, vector<2x1x16xf32>,
    %c0_128 = arith.constant 0 : index
    %c7_129 = arith.constant 7 : index
    %c0_130 = arith.constant 0 : index
    %491 = vector.load %arg10[%c0_128, %c7_129, %c0_130] : memref<2x8x32xf32, #tpu.memory_space<vmem>>, vector<2x1x32xf32>
    %492 = vector.shape_cast %491 : vector<2x1x32xf32> to vector<2x32xf32>
    %493 = vector.shape_cast %487 : vector<2x32xf32> to vector<2x1x32xf32>
    tpu.vector_store %arg10[%c0_128, %c7_129, %c0_130], %493 {strides = array<i32>} : memref<2x8x32xf32, #tpu.memory_space<vmem>>, vector<2x1x32xf32>,
    return
  }
  func.func @transform_0(%arg0: i32) -> (i32, i32, i32) {
    %c0_i32 = arith.constant 0 : i32
    %c0_i32_0 = arith.constant 0 : i32
    %c0_i32_1 = arith.constant 0 : i32
    return %arg0, %c0_i32, %c0_i32_0 : i32, i32, i32
  }
  func.func @transform_1(%arg0: i32) -> (i32, i32) {
    %c0_i32 = arith.constant 0 : i32
    %c0_i32_0 = arith.constant 0 : i32
    %c0_i32_1 = arith.constant 0 : i32
    return %c0_i32, %c0_i32_0 : i32, i32
  }
  func.func @transform_2(%arg0: i32) -> (i32, i32) {
    %c0_i32 = arith.constant 0 : i32
    %c0_i32_0 = arith.constant 0 : i32
    %c0_i32_1 = arith.constant 0 : i32
    return %c0_i32, %c0_i32_0 : i32, i32
  }
  func.func @transform_3(%arg0: i32) -> (i32, i32) {
    %c0_i32 = arith.constant 0 : i32
    %c0_i32_0 = arith.constant 0 : i32
    %c0_i32_1 = arith.constant 0 : i32
    return %c0_i32, %c0_i32_0 : i32, i32
  }
  func.func @transform_4(%arg0: i32) -> (i32, i32) {
    %c0_i32 = arith.constant 0 : i32
    %c0_i32_0 = arith.constant 0 : i32
    %c0_i32_1 = arith.constant 0 : i32
    return %c0_i32, %c0_i32_0 : i32, i32
  }
  func.func @transform_5(%arg0: i32) -> (i32, i32) {
    %c0_i32 = arith.constant 0 : i32
    %c0_i32_0 = arith.constant 0 : i32
    %c0_i32_1 = arith.constant 0 : i32
    return %c0_i32, %c0_i32_0 : i32, i32
  }
  func.func @transform_6(%arg0: i32) -> (i32, i32) {
    %c0_i32 = arith.constant 0 : i32
    %c0_i32_0 = arith.constant 0 : i32
    %c0_i32_1 = arith.constant 0 : i32
    return %c0_i32, %c0_i32_0 : i32, i32
  }
  func.func @transform_7(%arg0: i32) -> (i32, i32) {
    %c0_i32 = arith.constant 0 : i32
    %c0_i32_0 = arith.constant 0 : i32
    %c0_i32_1 = arith.constant 0 : i32
    return %c0_i32, %c0_i32_0 : i32, i32
  }
  func.func @transform_8(%arg0: i32) -> (i32, i32, i32) {
    %c0_i32 = arith.constant 0 : i32
    %c0_i32_0 = arith.constant 0 : i32
    %c0_i32_1 = arith.constant 0 : i32
    return %arg0, %c0_i32, %c0_i32_0 : i32, i32, i32
  }
  func.func @transform_9(%arg0: i32) -> (i32, i32, i32) {
    %c0_i32 = arith.constant 0 : i32
    %c0_i32_0 = arith.constant 0 : i32
    %c0_i32_1 = arith.constant 0 : i32
    return %arg0, %c0_i32, %c0_i32_0 : i32, i32, i32
  }
}

</mosaic_0001>

<bundles_post_ra>
// kernel: darnn_encoder.1
= control target key start
LH: loop header
LB: loop body
LE: loop exit
PB: predicated region body
PF: predicated region fallthrough
CT: control target
= control target key end

     0   :  { %16 = vsyncpa [#allocation4], 0  ;;  %vm92_vm0 = vcmask 261120   ;;  %v2312_v2 = vmov 0   ;;  %s2917_s0 = inlined_call_operand.vmem [shape: f32[2,8,16], index: 0, kind: input, shape index: {}]   ;;  %s2918_s1 = inlined_call_operand.vmem [shape: f32[8,1], index: 1, kind: input, shape index: {}]   ;;  %s2919_s2 = inlined_call_operand.vmem [shape: f32[1,32], index: 2, kind: input, shape index: {}]   ;;  %s2920_s3 = inlined_call_operand.vmem [shape: f32[1,32], index: 3, kind: input, shape index: {}]   ;;  %s2921_s4 = inlined_call_operand.vmem [shape: bf16[16,128], index: 4, kind: input, shape index: {}]   ;;  %s2922_s5 = inlined_call_operand.vmem [shape: bf16[32,128], index: 5, kind: input, shape index: {}]   ;;  %s2923_s6 = inlined_call_operand.vmem [shape: f32[1,128], index: 6, kind: input, shape index: {}]   ;;  %s2924_s7 = inlined_call_operand.<no memory space> [shape: f32[1,1], index: 7, kind: input, shape index: {}]   ;;  %s2925_s8 = inlined_call_operand.hbm [shape: f32[2,8,16], index: 8, kind: output, shape index: {0}]   ;;  %s2926_s9 = inlined_call_operand.hbm [shape: f32[2,8,32], index: 9, kind: output, shape index: {1}]  }
   0x1   :  { %v37_v0 = vld [vmem:[%s2918_s1] sm:$0xff]  ;;  %2142 = vset.pattern.permute.xlu0 %v2312_v2 }
   0x2   :  { %v2379_v1 = vld [vmem:[%s2920_s3] ss:$0 sm:$0xff]  ;;  %41 = vperm.xlu0 %2142, %v37_v0  }
   0x3   :  { %v96_v3 = vmul.f32 0.0, %v2379_v1 }
   0x5   :  { %v97_v4 = vsel %vm92_vm0, %v96_v3, 0.0 }
   0x6   :  { %98 = vadd.xlane.f32.xlu1 %v97_v4 }
   0x7   :  { %17 = vsyncpa [#allocation6], 0  ;;  %v2387_v5 = vld [vmem:[%s2919_s2] ss:$0 sm:$0xff]  ;;  %v2399_v10 = vld [vmem:[%s2917_s0 + $0x8] sm:$0xff]  ;;  %vm46_vm1 = vcmask 130048   ;;  %v61_v27 = vstv %s2924_s7 }
   0x8   :  { %v91_v6 = vmul.f32 0.0, %v2387_v5  ;;  %v2394_v9 = vld [vmem:[%s2917_s0] sm:$0xff]  ;;  %vm105_vm2 = vcmask 1041409   ;;  %vm108_vm3 = vcmask 123904   ;;  %v2313_v50 = vmov 0.0   ;;  %v2435_v51 = vld [vmem:[%s2922_s5 + $0x8] sm:$0xff]  }
   0x9   :  { %v2421_v48 = vld [vmem:[%s2922_s5] sm:$0xff]   ;;  %2019 = vmatprep.subr.bf16.mxu0 %v2313_v50  ;;  %vm2314_vm4 = vmmov 0   ;;  %2027 = vmatprep.subr.bf16.mxu1 %v2313_v50  ;;  %vm277_vm5 = vcmask 122880   ;;  %s2315_s25 = smov 64   ;;  %s2316_s26 = smov 32   ;;  %vm328_vm6 = vcmask 254976  }
   0xa   :  { %v93_v7 = vsel %vm92_vm0, %v91_v6, 0.0  ;;  %v2426_v49 = vld [vmem:[%s2921_s4] sm:$0xff]   ;;  %2023 = vmatprep.mubr.msk.bf16.mxu0 %vm2314_vm4, %v2313_v50  ;;  %2020 = vmatpush3.bf16.msra.mxu0 %v2421_v48  ;;  %s2317_s27 = smov 96   ;;  %vm317_vm7 = vcmask 253952  }
   0xb   :  { %2021 = vmatprep.subr.bf16.mxu0 %v2313_v50  ;;  %2028 = vmatpush3.bf16.msra.mxu1 %v2426_v49 }
   0xc   :  { %2029 = vmatprep.mubr.msk.bf16.mxu1 %vm2314_vm4, %v2313_v50  ;;  %2033 = vmatprep.subr.bf16.mxu1 %v2313_v50 }
   0xe   :  { %2022 = vmatpush3.bf16.msra.mxu0 %v2435_v51 }
   0xf   :  { %2041 = vmatprep.subr.bf16.mxu0 %v2313_v50 }
  0x11   :  { %2024 = vmatmul.mubr.bf16.vlgmr.msra.gmra.mrb[0].mxu0 %v2312_v2 }
  0x12   :  { %2042 = vmatpush3.bf16.msra.mxu0 %v2426_v49  ;;  %2043 = vmatprep.mubr.msk.bf16.mxu0 %vm2314_vm4, %v2313_v50 }
  0x13   :  { %2055 = vmatprep.subr.bf16.mxu0 %v2313_v50 }
  0x21   :  { %94 = vadd.xlane.f32.xlu0 %v93_v7 }
  0x37   :  { %320 = vrot.lane.b32.xlu0 %v2387_v5, %s2317_s27 }
  0x81   :  { %v42_v8 = vpop.permute.xlu0 %41 }
  0x82   :  { %v44_v11 = vmul.f32 %v42_v8, %v2394_v9  ;;  %v45_v12 = vmul.f32 %v42_v8, %v2399_v10  ;;  %v2465_v8 = vld [vmem:[%s2923_s6] ss:$0 sm:$0xff] }
  0x84   :  { %v47_v13 = vsel %vm46_vm1, %v44_v11, 0.0  ;;  %v54_v14 = vsel %vm46_vm1, %v45_v12, 0.0 }
  0x85   :  { %v48_v15 = vrot.slane %v47_v13, 4  ;;  %v55_v16 = vrot.slane %v54_v14, 4 }
  0x87   :  { %v49_v17 = vadd.f32 %v48_v15, %v47_v13  ;;  %v56_v18 = vadd.f32 %v55_v16, %v54_v14 }
  0x89   :  { %v50_v19 = vrot.slane %v49_v17, 2  ;;  %v57_v20 = vrot.slane %v56_v18, 2 }
  0x8b   :  { %v51_v21 = vadd.f32 %v50_v19, %v49_v17  ;;  %v58_v22 = vadd.f32 %v57_v20, %v56_v18 }
  0x8d   :  { %v52_v23 = vrot.slane %v51_v21, 1  ;;  %v59_v24 = vrot.slane %v58_v22, 1 }
  0x8f   :  { %v53_v25 = vadd.f32 %v52_v23, %v51_v21  ;;  %v60_v26 = vadd.f32 %v59_v24, %v58_v22 }
  0x91   :  { %v2408_v30 = vadd.f32 %v61_v27, %v53_v25  ;;  %v2410_v31 = vadd.f32 %v61_v27, %v60_v26 }
  0x93   :  { %v99_v28 = vpop.xlane.xlu1 %98 }
  0xae   :  { %v95_v29 = vpop.xlane.xlu0 %94 }
  0xaf   :  { %v100_v32 = vadd.f32 %v99_v28, %v95_v29 }
  0xb1   :  { %v101_v33 = vadd.f32 %v100_v32, %v2408_v30  ;;  %v102_v34 = vadd.f32 %v100_v32, %v2410_v31 }
  0xb2   :  { %v2478_v29 = vpop.permute.xlu0 %320 }
  0xb3   :  { %v106_v35 = vsel %vm105_vm2, %v102_v34, %v101_v33 }
  0xb4   :  { %v109_v36 = vsel %vm108_vm3, %v106_v35, -inf }
  0xb5   :  { %110 = vmax.xlane.f32.xlu1 %v109_v36 }
  0xe4   :  { %v190_v3 = vpop.f32.mrb[0].mxu0 }
  0xe5   :  { %v2025_v4 = vpop.f32.mrb[1].mxu0 }
  0xe6   :  { %v193_v6 = vpop.f32.mrb[2].mxu0  ;;  %v386_v4 = vrot.slane %v2399_v10, 1 }
  0xe7   :  { %v2026_v7 = vpop.f32.mrb[3].mxu0 }
 0x142   :  { %v111_v37 = vpop.xlane.xlu1 %110 }
 0x143   :  { %v113_v38 = vrot.slane %v111_v37, 1  ;;  %v116_v39 = vsub.f32 %v101_v33, %v111_v37 }
 0x145   :  { %v117_v40 = vsub.f32 %v102_v34, %v113_v38  ;;  %v118_v41 = vmul.f32 1.442695, %v116_v39 }
 0x147   :  { %v120_v42 = vmul.f32 1.442695, %v117_v40 }
 0x149   :  { %2146 = vpow2.f32 %v120_v42 }
 0x14a   :  { %2148 = vpow2.f32 %v118_v41 }
 0x153   :  { %v2147_v43 = vpop.eup %2146 }
 0x154   :  { %v124_v44 = vrot.slane %v2147_v43, 7  ;;  %v2149_v45 = vpop.eup %2148 }
 0x156   :  { %v125_v46 = vsel %vm105_vm2, %v124_v44, %v2149_v45 }
 0x157   :  { %v127_v47 = vsel %vm108_vm3, %v125_v46, 0.0 }
 0x158   :  { %128 = vadd.xlane.f32.xlu1 %v127_v47 }
 0x1e5   :  { %v129_v52 = vpop.xlane.xlu1 %128 }
 0x1e6   :  { %2150 = vrcp.f32 %v129_v52 }
 0x1f0   :  { %v2151_v53 = vpop.eup %2150 }
 0x1f1   :  { %v132_v54 = vrot.slane %v2151_v53, 1  ;;  %v135_v55 = vmul.f32 %v2151_v53, %v2149_v45 }
 0x1f3   :  { %v136_v56 = vmul.f32 %v2147_v43, %v132_v54  ;;  %v137_v57 = vmul.f32 %v135_v55, %v2394_v9 }
 0x1f5   :  { %v138_v58 = vmul.f32 %v136_v56, %v2399_v10  ;;  %278 = vst.msk [vmem:[#allocation3] sm:$0x1] %vm277_vm5, %v137_v57  ;;  %v139_v59 = vpack.c.bf16 %v137_v57, %v137_v57 }
 0x1f7   :  { %v140_v60 = vpack.c.bf16 %v138_v58, %v138_v58  ;;  %279 = vst.msk [vmem:[#allocation3 + $0x8] sm:$0x1] %vm277_vm5, %v138_v58  ;;  %v198_v62 = vunpack.c.l.b16 %v139_v59 }
 0x1f9   :  { %v199_v61 = vunpack.c.l.b16 %v140_v60 }
 0x1fb   :  { %v200_v63 = vrot.slane %v199_v61, 7 }
 0x1fd   :  { %v201_v0 = vsel %vm105_vm2, %v200_v63, %v198_v62 }
 0x1fe   :  { %v202_v2 = vpack.c.b16 %v201_v0, %v201_v0 }
 0x200   :  { %2030 = vmatmul.mubr.msk.bf16.vlgmr.msra.gmra.mrb[0].mxu1 %vm46_vm1, %v202_v2  ;;  %v385_v2 = vrot.slane %v2394_v9, 1 }
 0x201   :  { %2034 = vmatpush3.bf16.msra.mxu1 %v2421_v48  ;;  %2037 = vmatprep.mubr.msk.bf16.mxu1 %vm2314_vm4, %v2313_v50 }
 0x202   :  { %2035 = vmatprep.subr.bf16.mxu1 %v2313_v50 }
 0x205   :  { %2036 = vmatpush3.bf16.msra.mxu1 %v2435_v51 }
 0x206   :  { %2047 = vmatprep.subr.bf16.mxu1 %v2313_v50 }
 0x2d3   :  { %v246_v11 = vpop.f32.mrb[0].mxu1 }
 0x2d4   :  { %v247_v12 = vadd.f32 %v246_v11, %v190_v3  ;;  %v2031_v13 = vpop.f32.mrb[1].mxu1 }
 0x2d5   :  { %v249_v14 = vpop.f32.mrb[2].mxu1 }
 0x2d6   :  { %v252_v15 = vadd.f32 %v2465_v8, %v247_v12  ;;  %v2032_v16 = vpop.f32.mrb[3].mxu1 }
 0x2d8   :  { %2152 = vtanh.f32 %v252_v15  ;;  %v1957_v18 = vmul.f32 -1.442695, %v252_v15 }
 0x2da   :  { %2154 = vpow2.f32 %v1957_v18 }
 0x2e2   :  { %v2153_v17 = vpop.eup %2152 }
 0x2e3   :  { %262 = vrot.lane.b32.xlu1 %v2153_v17, %s2315_s25 }
 0x2e4   :  { %v2155_v19 = vpop.eup %2154 }
 0x2e5   :  { %v256_v20 = vadd.f32 1.0, %v2155_v19 }
 0x2e7   :  { %2156 = vrcp.f32 %v256_v20 }
 0x2f1   :  { %v2157_v21 = vpop.eup %2156 }
 0x2f2   :  { %v260_v24 = vmul.f32 0.0, %v2157_v21 }
 0x355   :  { %v263_v22 = vpop.permute.xlu1 %262 }
 0x356   :  { %v265_v23 = vmul.f32 %v2157_v21, %v263_v22 }
 0x358   :  { %267 = vrot.lane.b32.xlu1 %v265_v23, %s2316_s26 }
 0x3ca   :  { %v268_v25 = vpop.permute.xlu1 %267 }
 0x3cb   :  { %v2472_v26 = vadd.f32 %v268_v25, %v260_v24 }
 0x3cd   :  { %2158 = vtanh.f32 %v2472_v26 }
 0x3d7   :  { %v2159_v27 = vpop.eup %2158 }
 0x3d8   :  { %273 = vrot.lane.b32.xlu1 %v2159_v27, %s2315_s25 }
 0x3dc   :  { %332 = vrot.lane.b32.xlu1 %v2379_v1, %s2316_s26 }
 0x44a   :  { %v274_v28 = vpop.permute.xlu1 %273 }
 0x44b   :  { %v2480_v32 = vmul.f32 %v2157_v21, %v274_v28 }
 0x44d   :  { %v323_v5 = vmul.f32 %v2478_v29, %v2480_v32  ;;  %v393_v47 = vpack.c.bf16 %v2480_v32, %v2480_v32 }
 0x44e   :  { %v2484_v33 = vpop.permute.xlu1 %332 }
 0x44f   :  { %325 = vrot.lane.b32.xlu1 %v323_v5, %s2316_s26  ;;  %v335_v34 = vmul.f32 %v2484_v33, %v2472_v26 }
 0x453   :  { %337 = vrot.lane.b32.xlu1 %v335_v34, %s2317_s27 }
 0x4c1   :  { %v326_v35 = vpop.permute.xlu1 %325 }
 0x4c2   :  { %v329_v1 = vsel %vm328_vm6, %v326_v35, 0.0 }
 0x4c3   :  { %330 = vadd.xlane.f32.xlu1 %v329_v1 }
 0x4c5   :  { %v338_v36 = vpop.permute.xlu1 %337 }
 0x4c6   :  { %v340_v37 = vsel %vm328_vm6, %v338_v36, 0.0 }
 0x4c7   :  { %341 = vadd.xlane.f32.xlu0 %v340_v37 }
 0x550   :  { %v331_v38 = vpop.xlane.xlu1 %330 }
 0x554   :  { %v342_v39 = vpop.xlane.xlu0 %341 }
 0x555   :  { %v343_v40 = vadd.f32 %v342_v39, %v331_v38 }
 0x557   :  { %v345_v41 = vrot.slane %v343_v40, 1  ;;  %v348_v43 = vadd.f32 %v343_v40, %v2408_v30 }
 0x559   :  { %v349_v42 = vadd.f32 %v345_v41, %v2410_v31 }
 0x55b   :  { %v352_v44 = vrot.slane %v349_v42, 7 }
 0x55d   :  { %v353_v45 = vsel %vm105_vm2, %v352_v44, %v348_v43 }
 0x55e   :  { %v355_v46 = vsel %vm108_vm3, %v353_v45, -inf }
 0x55f   :  { %356 = vmax.xlane.f32.xlu1 %v355_v46 }
 0x570   :  { %395 = vrot.lane.b32.xlu1 %v393_v47, %s2316_s26 }
 0x5ec   :  { %v357_v52 = vpop.xlane.xlu1 %356 }
 0x5ed   :  { %v359_v53 = vrot.slane %v357_v52, 1  ;;  %v362_v54 = vsub.f32 %v348_v43, %v357_v52 }
 0x5ef   :  { %v363_v55 = vsub.f32 %v349_v42, %v359_v53  ;;  %v364_v57 = vmul.f32 1.442695, %v362_v54 }
 0x5f0   :  { %v396_v56 = vpop.permute.xlu1 %395 }
 0x5f1   :  { %v366_v58 = vmul.f32 1.442695, %v363_v55  ;;  %2038 = vmatmul.mubr.msk.bf16.vlgmr.msra.gmra.mrb[4].mxu1 %vm92_vm0, %v396_v56 }
 0x5f2   :  { %2048 = vmatpush3.bf16.msra.mxu1 %v2421_v48  ;;  %2051 = vmatprep.mubr.msk.bf16.mxu1 %vm2314_vm4, %v2313_v50 }
 0x5f3   :  { %2160 = vpow2.f32 %v366_v58  ;;  %2049 = vmatprep.subr.bf16.mxu1 %v2313_v50 }
 0x5f4   :  { %2162 = vpow2.f32 %v364_v57 }
 0x5f6   :  { %2050 = vmatpush3.bf16.msra.mxu1 %v2435_v51 }
 0x5f7   :  { %2061 = vmatprep.subr.bf16.mxu1 %v2313_v50 }
 0x5fd   :  { %v2161_v59 = vpop.eup %2160 }
 0x5fe   :  { %v370_v60 = vrot.slane %v2161_v59, 7  ;;  %v2163_v61 = vpop.eup %2162 }
 0x600   :  { %v371_v62 = vsel %vm105_vm2, %v370_v60, %v2163_v61 }
 0x601   :  { %v373_v63 = vsel %vm108_vm3, %v371_v62, 0.0 }
 0x602   :  { %374 = vadd.xlane.f32.xlu0 %v373_v63 }
 0x68f   :  { %v375_v0 = vpop.xlane.xlu0 %374 }
 0x690   :  { %2164 = vrcp.f32 %v375_v0 }
 0x69a   :  { %v2165_v3 = vpop.eup %2164 }
 0x69b   :  { %v378_v6 = vrot.slane %v2165_v3, 1  ;;  %v381_v7 = vmul.f32 %v2165_v3, %v2163_v61 }
 0x69d   :  { %v382_v11 = vmul.f32 %v2161_v59, %v378_v6  ;;  %v389_v12 = vmul.f32 %v385_v2, %v381_v7 }
 0x69f   :  { %v390_v13 = vmul.f32 %v386_v4, %v382_v11  ;;  %515 = vst.msk [vmem:[#allocation3 + $0x1] sm:$0x1] %vm277_vm5, %v389_v12  ;;  %v391_v14 = vpack.c.bf16 %v389_v12, %v389_v12 }
 0x6a1   :  { %v392_v15 = vpack.c.bf16 %v390_v13, %v390_v13  ;;  %516 = vst.msk [vmem:[#allocation3 + $0x9] sm:$0x1] %vm277_vm5, %v390_v13  ;;  %v442_v17 = vunpack.c.l.b16 %v391_v14 }
 0x6a3   :  { %v443_v16 = vunpack.c.l.b16 %v392_v15 }
 0x6a5   :  { %v444_v18 = vrot.slane %v443_v16, 7 }
 0x6a7   :  { %v445_v19 = vsel %vm105_vm2, %v444_v18, %v442_v17 }
 0x6a8   :  { %v446_v20 = vpack.c.b16 %v445_v19, %v445_v19 }
 0x6aa   :  { %2044 = vmatmul.mubr.msk.bf16.vlgmr.msra.gmra.mrb[4].mxu0 %vm46_vm1, %v446_v20 }
 0x6ab   :  { %2056 = vmatpush3.bf16.msra.mxu0 %v2426_v49  ;;  %2057 = vmatprep.mubr.msk.bf16.mxu0 %vm2314_vm4, %v2313_v50 }
 0x6ac   :  { %2069 = vmatprep.subr.bf16.mxu0 %v2313_v50 }
 0x6c4   :  { %v434_v21 = vpop.f32.mrb[4].mxu1 }
 0x6c5   :  { %v2039_v22 = vpop.f32.mrb[5].mxu1 }
 0x6c6   :  { %v437_v23 = vpop.f32.mrb[6].mxu1 }
 0x6c7   :  { %v2040_v24 = vpop.f32.mrb[7].mxu1 }
 0x77d   :  { %v484_v25 = vpop.f32.mrb[4].mxu0 }
 0x77e   :  { %v485_v27 = vadd.f32 %v484_v25, %v434_v21  ;;  %v2045_v28 = vpop.f32.mrb[5].mxu0  ;;  %v612_v25 = vrot.slane %v2394_v9, 2 }
 0x77f   :  { %v487_v5 = vpop.f32.mrb[6].mxu0  ;;  %v613_v28 = vrot.slane %v2399_v10, 2 }
 0x780   :  { %v490_v34 = vadd.f32 %v2465_v8, %v485_v27  ;;  %v2046_v35 = vpop.f32.mrb[7].mxu0 }
 0x782   :  { %2166 = vtanh.f32 %v490_v34  ;;  %v1960_v36 = vmul.f32 -1.442695, %v490_v34 }
 0x784   :  { %2168 = vpow2.f32 %v1960_v36 }
 0x78c   :  { %v2167_v1 = vpop.eup %2166 }
 0x78d   :  { %500 = vrot.lane.b32.xlu0 %v2167_v1, %s2315_s25 }
 0x78e   :  { %v2169_v37 = vpop.eup %2168 }
 0x78f   :  { %v494_v38 = vadd.f32 1.0, %v2169_v37 }
 0x791   :  { %2170 = vrcp.f32 %v494_v38 }
 0x79b   :  { %v2171_v39 = vpop.eup %2170 }
 0x79c   :  { %v498_v42 = vmul.f32 %v2171_v39, %v2472_v26 }
 0x7ff   :  { %v501_v40 = vpop.permute.xlu0 %500 }
 0x800   :  { %v503_v41 = vmul.f32 %v2171_v39, %v501_v40 }
 0x802   :  { %505 = vrot.lane.b32.xlu1 %v503_v41, %s2316_s26 }
 0x874   :  { %v506_v43 = vpop.permute.xlu1 %505 }
 0x875   :  { %v2522_v44 = vadd.f32 %v506_v43, %v498_v42 }
 0x877   :  { %2172 = vtanh.f32 %v2522_v44  ;;  %v564_v46 = vmul.f32 %v2522_v44, %v2484_v33 }
 0x881   :  { %v2173_v45 = vpop.eup %2172 }
 0x882   :  { %511 = vrot.lane.b32.xlu1 %v2173_v45, %s2315_s25 }
 0x886   :  { %566 = vrot.lane.b32.xlu1 %v564_v46, %s2317_s27 }
 0x8f4   :  { %v512_v47 = vpop.permute.xlu1 %511 }
 0x8f5   :  { %v2529_v52 = vmul.f32 %v2171_v39, %v512_v47 }
 0x8f7   :  { %v556_v53 = vmul.f32 %v2529_v52, %v2478_v29  ;;  %v620_v55 = vpack.c.bf16 %v2529_v52, %v2529_v52 }
 0x8f8   :  { %v567_v26 = vpop.permute.xlu1 %566 }
 0x8f9   :  { %558 = vrot.lane.b32.xlu0 %v556_v53, %s2316_s26  ;;  %v569_v54 = vsel %vm328_vm6, %v567_v26, 0.0 }
 0x8fa   :  { %570 = vadd.xlane.f32.xlu1 %v569_v54 }
 0x90b   :  { %622 = vrot.lane.b32.xlu1 %v620_v55, %s2316_s26 }
 0x96b   :  { %v559_v56 = vpop.permute.xlu0 %558 }
 0x96c   :  { %v561_v57 = vsel %vm328_vm6, %v559_v56, 0.0 }
 0x96d   :  { %562 = vadd.xlane.f32.xlu0 %v561_v57 }
 0x987   :  { %v571_v58 = vpop.xlane.xlu1 %570 }
 0x98b   :  { %v623_v59 = vpop.permute.xlu1 %622 }
 0x98c   :  { %2052 = vmatmul.mubr.msk.bf16.vlgmr.msra.gmra.mrb[8].mxu1 %vm92_vm0, %v623_v59 }
 0x98d   :  { %2062 = vmatpush3.bf16.msra.mxu1 %v2421_v48  ;;  %2065 = vmatprep.mubr.msk.bf16.mxu1 %vm2314_vm4, %v2313_v50 }
 0x98e   :  { %2063 = vmatprep.subr.bf16.mxu1 %v2313_v50 }
 0x991   :  { %2064 = vmatpush3.bf16.msra.mxu1 %v2435_v51 }
 0x992   :  { %2075 = vmatprep.subr.bf16.mxu1 %v2313_v50 }
 0x9fa   :  { %v563_v60 = vpop.xlane.xlu0 %562 }
 0x9fb   :  { %v572_v61 = vadd.f32 %v571_v58, %v563_v60 }
 0x9fd   :  { %v574_v62 = vrot.slane %v572_v61, 1  ;;  %v577_v0 = vadd.f32 %v572_v61, %v2408_v30 }
 0x9ff   :  { %v578_v63 = vadd.f32 %v574_v62, %v2410_v31 }
 0xa01   :  { %v581_v2 = vrot.slane %v578_v63, 7 }
 0xa03   :  { %v582_v3 = vsel %vm105_vm2, %v581_v2, %v577_v0 }
 0xa04   :  { %v584_v4 = vsel %vm108_vm3, %v582_v3, -inf }
 0xa05   :  { %585 = vmax.xlane.f32.xlu0 %v584_v4 }
 0xa5f   :  { %v661_v6 = vpop.f32.mrb[8].mxu1 }
 0xa60   :  { %v2053_v7 = vpop.f32.mrb[9].mxu1 }
 0xa61   :  { %v664_v11 = vpop.f32.mrb[10].mxu1 }
 0xa62   :  { %v2054_v12 = vpop.f32.mrb[11].mxu1 }
 0xa92   :  { %v586_v13 = vpop.xlane.xlu0 %585 }
 0xa93   :  { %v588_v14 = vrot.slane %v586_v13, 1  ;;  %v591_v15 = vsub.f32 %v577_v0, %v586_v13 }
 0xa95   :  { %v592_v16 = vsub.f32 %v578_v63, %v588_v14  ;;  %v593_v17 = vmul.f32 1.442695, %v591_v15 }
 0xa97   :  { %v595_v18 = vmul.f32 1.442695, %v592_v16 }
 0xa99   :  { %2174 = vpow2.f32 %v595_v18 }
 0xa9a   :  { %2176 = vpow2.f32 %v593_v17 }
 0xaa3   :  { %v2175_v19 = vpop.eup %2174 }
 0xaa4   :  { %v599_v20 = vrot.slane %v2175_v19, 7  ;;  %v2177_v21 = vpop.eup %2176 }
 0xaa6   :  { %v600_v22 = vsel %vm105_vm2, %v599_v20, %v2177_v21 }
 0xaa7   :  { %v602_v23 = vsel %vm108_vm3, %v600_v22, 0.0 }
 0xaa8   :  { %603 = vadd.xlane.f32.xlu0 %v602_v23 }
 0xb35   :  { %v604_v24 = vpop.xlane.xlu0 %603 }
 0xb36   :  { %2178 = vrcp.f32 %v604_v24 }
 0xb40   :  { %v2179_v27 = vpop.eup %2178 }
 0xb41   :  { %v607_v5 = vrot.slane %v2179_v27, 1  ;;  %v610_v34 = vmul.f32 %v2179_v27, %v2177_v21 }
 0xb43   :  { %v611_v35 = vmul.f32 %v2175_v19, %v607_v5  ;;  %v616_v1 = vmul.f32 %v612_v25, %v610_v34 }
 0xb45   :  { %v617_v36 = vmul.f32 %v613_v28, %v611_v35  ;;  %742 = vst.msk [vmem:[#allocation3 + $0x2] sm:$0x1] %vm277_vm5, %v616_v1  ;;  %v618_v37 = vpack.c.bf16 %v616_v1, %v616_v1 }
 0xb47   :  { %v619_v38 = vpack.c.bf16 %v617_v36, %v617_v36  ;;  %743 = vst.msk [vmem:[#allocation3 + $0xa] sm:$0x1] %vm277_vm5, %v617_v36  ;;  %v669_v40 = vunpack.c.l.b16 %v618_v37 }
 0xb49   :  { %v670_v39 = vunpack.c.l.b16 %v619_v38 }
 0xb4b   :  { %v671_v41 = vrot.slane %v670_v39, 7 }
 0xb4d   :  { %v672_v42 = vsel %vm105_vm2, %v671_v41, %v669_v40 }
 0xb4e   :  { %v673_v43 = vpack.c.b16 %v672_v42, %v672_v42 }
 0xb50   :  { %2058 = vmatmul.mubr.msk.bf16.vlgmr.msra.gmra.mrb[8].mxu0 %vm46_vm1, %v673_v43 }
 0xb51   :  { %2070 = vmatpush3.bf16.msra.mxu0 %v2426_v49  ;;  %2071 = vmatprep.mubr.msk.bf16.mxu0 %vm2314_vm4, %v2313_v50 }
 0xb52   :  { %2083 = vmatprep.subr.bf16.mxu0 %v2313_v50 }
 0xc23   :  { %v711_v45 = vpop.f32.mrb[8].mxu0 }
 0xc24   :  { %v712_v46 = vadd.f32 %v711_v45, %v661_v6  ;;  %v2059_v47 = vpop.f32.mrb[9].mxu0 }
 0xc25   :  { %v714_v53 = vpop.f32.mrb[10].mxu0 }
 0xc26   :  { %v717_v26 = vadd.f32 %v2465_v8, %v712_v46  ;;  %v2060_v54 = vpop.f32.mrb[11].mxu0  ;;  %v839_v46 = vrot.slane %v2394_v9, 3  ;;  %v840_v53 = vrot.slane %v2399_v10, 3 }
 0xc28   :  { %2180 = vtanh.f32 %v717_v26  ;;  %v1963_v56 = vmul.f32 -1.442695, %v717_v26 }
 0xc2a   :  { %2182 = vpow2.f32 %v1963_v56 }
 0xc32   :  { %v2181_v55 = vpop.eup %2180 }
 0xc33   :  { %727 = vrot.lane.b32.xlu0 %v2181_v55, %s2315_s25 }
 0xc34   :  { %v2183_v57 = vpop.eup %2182 }
 0xc35   :  { %v721_v58 = vadd.f32 1.0, %v2183_v57 }
 0xc37   :  { %2184 = vrcp.f32 %v721_v58 }
 0xc41   :  { %v2185_v59 = vpop.eup %2184 }
 0xc42   :  { %v725_v62 = vmul.f32 %v2185_v59, %v2522_v44 }
 0xca5   :  { %v728_v60 = vpop.permute.xlu0 %727 }
 0xca6   :  { %v730_v61 = vmul.f32 %v2185_v59, %v728_v60 }
 0xca8   :  { %732 = vrot.lane.b32.xlu1 %v730_v61, %s2316_s26 }
 0xd1a   :  { %v733_v63 = vpop.permute.xlu1 %732 }
 0xd1b   :  { %v2566_v0 = vadd.f32 %v733_v63, %v725_v62 }
 0xd1d   :  { %2186 = vtanh.f32 %v2566_v0  ;;  %v791_v3 = vmul.f32 %v2566_v0, %v2484_v33 }
 0xd27   :  { %v2187_v2 = vpop.eup %2186 }
 0xd28   :  { %738 = vrot.lane.b32.xlu1 %v2187_v2, %s2315_s25 }
 0xd2c   :  { %793 = vrot.lane.b32.xlu1 %v791_v3, %s2317_s27 }
 0xd9a   :  { %v739_v4 = vpop.permute.xlu1 %738 }
 0xd9b   :  { %v2573_v6 = vmul.f32 %v2185_v59, %v739_v4 }
 0xd9d   :  { %v783_v7 = vmul.f32 %v2573_v6, %v2478_v29  ;;  %v847_v12 = vpack.c.bf16 %v2573_v6, %v2573_v6 }
 0xd9e   :  { %v794_v44 = vpop.permute.xlu1 %793 }
 0xd9f   :  { %785 = vrot.lane.b32.xlu0 %v783_v7, %s2316_s26  ;;  %v796_v11 = vsel %vm328_vm6, %v794_v44, 0.0 }
 0xda0   :  { %797 = vadd.xlane.f32.xlu1 %v796_v11 }
 0xdb1   :  { %849 = vrot.lane.b32.xlu1 %v847_v12, %s2316_s26 }
 0xe11   :  { %v786_v13 = vpop.permute.xlu0 %785 }
 0xe12   :  { %v788_v14 = vsel %vm328_vm6, %v786_v13, 0.0 }
 0xe13   :  { %789 = vadd.xlane.f32.xlu0 %v788_v14 }
 0xe2d   :  { %v798_v15 = vpop.xlane.xlu1 %797 }
 0xe31   :  { %v850_v16 = vpop.permute.xlu1 %849 }
 0xe32   :  { %2066 = vmatmul.mubr.msk.bf16.vlgmr.msra.gmra.mrb[12].mxu1 %vm92_vm0, %v850_v16 }
 0xe33   :  { %2076 = vmatpush3.bf16.msra.mxu1 %v2421_v48  ;;  %2079 = vmatprep.mubr.msk.bf16.mxu1 %vm2314_vm4, %v2313_v50 }
 0xe34   :  { %2077 = vmatprep.subr.bf16.mxu1 %v2313_v50 }
 0xe37   :  { %2078 = vmatpush3.bf16.msra.mxu1 %v2435_v51 }
 0xe38   :  { %2089 = vmatprep.subr.bf16.mxu1 %v2313_v50 }
 0xea0   :  { %v790_v17 = vpop.xlane.xlu0 %789 }
 0xea1   :  { %v799_v18 = vadd.f32 %v798_v15, %v790_v17 }
 0xea3   :  { %v801_v19 = vrot.slane %v799_v18, 1  ;;  %v804_v21 = vadd.f32 %v799_v18, %v2408_v30 }
 0xea5   :  { %v805_v20 = vadd.f32 %v801_v19, %v2410_v31 }
 0xea7   :  { %v808_v22 = vrot.slane %v805_v20, 7 }
 0xea9   :  { %v809_v23 = vsel %vm105_vm2, %v808_v22, %v804_v21 }
 0xeaa   :  { %v811_v24 = vsel %vm108_vm3, %v809_v23, -inf }
 0xeab   :  { %812 = vmax.xlane.f32.xlu0 %v811_v24 }
 0xf05   :  { %v888_v25 = vpop.f32.mrb[12].mxu1 }
 0xf06   :  { %v2067_v27 = vpop.f32.mrb[13].mxu1 }
 0xf07   :  { %v891_v28 = vpop.f32.mrb[14].mxu1 }
 0xf08   :  { %v2068_v5 = vpop.f32.mrb[15].mxu1 }
 0xf38   :  { %v813_v34 = vpop.xlane.xlu0 %812 }
 0xf39   :  { %v815_v35 = vrot.slane %v813_v34, 1  ;;  %v818_v1 = vsub.f32 %v804_v21, %v813_v34 }
 0xf3b   :  { %v819_v36 = vsub.f32 %v805_v20, %v815_v35  ;;  %v820_v37 = vmul.f32 1.442695, %v818_v1 }
 0xf3d   :  { %v822_v38 = vmul.f32 1.442695, %v819_v36 }
 0xf3f   :  { %2188 = vpow2.f32 %v822_v38 }
 0xf40   :  { %2190 = vpow2.f32 %v820_v37 }
 0xf49   :  { %v2189_v39 = vpop.eup %2188 }
 0xf4a   :  { %v826_v40 = vrot.slane %v2189_v39, 7  ;;  %v2191_v41 = vpop.eup %2190 }
 0xf4c   :  { %v827_v42 = vsel %vm105_vm2, %v826_v40, %v2191_v41 }
 0xf4d   :  { %v829_v43 = vsel %vm108_vm3, %v827_v42, 0.0 }
 0xf4e   :  { %830 = vadd.xlane.f32.xlu0 %v829_v43 }
 0xfdb   :  { %v831_v45 = vpop.xlane.xlu0 %830 }
 0xfdc   :  { %2192 = vrcp.f32 %v831_v45 }
 0xfe6   :  { %v2193_v47 = vpop.eup %2192 }
 0xfe7   :  { %v834_v26 = vrot.slane %v2193_v47, 1  ;;  %v837_v54 = vmul.f32 %v2193_v47, %v2191_v41 }
 0xfe9   :  { %v838_v55 = vmul.f32 %v2189_v39, %v834_v26  ;;  %v843_v56 = vmul.f32 %v839_v46, %v837_v54 }
 0xfeb   :  { %v844_v57 = vmul.f32 %v840_v53, %v838_v55  ;;  %969 = vst.msk [vmem:[#allocation3 + $0x3] sm:$0x1] %vm277_vm5, %v843_v56  ;;  %v845_v58 = vpack.c.bf16 %v843_v56, %v843_v56 }
 0xfed   :  { %v846_v59 = vpack.c.bf16 %v844_v57, %v844_v57  ;;  %970 = vst.msk [vmem:[#allocation3 + $0xb] sm:$0x1] %vm277_vm5, %v844_v57  ;;  %v896_v61 = vunpack.c.l.b16 %v845_v58 }
 0xfef   :  { %v897_v60 = vunpack.c.l.b16 %v846_v59 }
 0xff1   :  { %v898_v62 = vrot.slane %v897_v60, 7 }
 0xff3   :  { %v899_v63 = vsel %vm105_vm2, %v898_v62, %v896_v61 }
 0xff4   :  { %v900_v2 = vpack.c.b16 %v899_v63, %v899_v63 }
 0xff6   :  { %2072 = vmatmul.mubr.msk.bf16.vlgmr.msra.gmra.mrb[12].mxu0 %vm46_vm1, %v900_v2 }
 0xff7   :  { %2084 = vmatpush3.bf16.msra.mxu0 %v2426_v49  ;;  %2085 = vmatprep.mubr.msk.bf16.mxu0 %vm2314_vm4, %v2313_v50 }
 0xff8   :  { %2097 = vmatprep.subr.bf16.mxu0 %v2313_v50 }
0x10c9   :  { %v938_v3 = vpop.f32.mrb[12].mxu0 }
0x10ca   :  { %v939_v4 = vadd.f32 %v938_v3, %v888_v25  ;;  %v2073_v7 = vpop.f32.mrb[13].mxu0 }
0x10cb   :  { %v941_v44 = vpop.f32.mrb[14].mxu0  ;;  %v1066_v7 = vrot.slane %v2394_v9, 4 }
0x10cc   :  { %v944_v11 = vadd.f32 %v2465_v8, %v939_v4  ;;  %v2074_v12 = vpop.f32.mrb[15].mxu0 }
0x10ce   :  { %2194 = vtanh.f32 %v944_v11  ;;  %v1966_v14 = vmul.f32 -1.442695, %v944_v11  ;;  %v1067_v11 = vrot.slane %v2399_v10, 4 }
0x10d0   :  { %2196 = vpow2.f32 %v1966_v14 }
0x10d8   :  { %v2195_v13 = vpop.eup %2194 }
0x10d9   :  { %954 = vrot.lane.b32.xlu0 %v2195_v13, %s2315_s25 }
0x10da   :  { %v2197_v15 = vpop.eup %2196 }
0x10db   :  { %v948_v16 = vadd.f32 1.0, %v2197_v15 }
0x10dd   :  { %2198 = vrcp.f32 %v948_v16 }
0x10e7   :  { %v2199_v17 = vpop.eup %2198 }
0x10e8   :  { %v952_v20 = vmul.f32 %v2199_v17, %v2566_v0 }
0x114b   :  { %v955_v18 = vpop.permute.xlu0 %954 }
0x114c   :  { %v957_v19 = vmul.f32 %v2199_v17, %v955_v18 }
0x114e   :  { %959 = vrot.lane.b32.xlu1 %v957_v19, %s2316_s26 }
0x11c0   :  { %v960_v21 = vpop.permute.xlu1 %959 }
0x11c1   :  { %v2610_v22 = vadd.f32 %v960_v21, %v952_v20 }
0x11c3   :  { %2200 = vtanh.f32 %v2610_v22  ;;  %v1018_v24 = vmul.f32 %v2610_v22, %v2484_v33 }
0x11cd   :  { %v2201_v23 = vpop.eup %2200 }
0x11ce   :  { %965 = vrot.lane.b32.xlu1 %v2201_v23, %s2315_s25 }
0x11d2   :  { %1020 = vrot.lane.b32.xlu1 %v1018_v24, %s2317_s27 }
0x1240   :  { %v966_v25 = vpop.permute.xlu1 %965 }
0x1241   :  { %v2617_v27 = vmul.f32 %v2199_v17, %v966_v25 }
0x1243   :  { %v1010_v28 = vmul.f32 %v2617_v27, %v2478_v29  ;;  %v1074_v34 = vpack.c.bf16 %v2617_v27, %v2617_v27 }
0x1244   :  { %v1021_v0 = vpop.permute.xlu1 %1020 }
0x1245   :  { %1012 = vrot.lane.b32.xlu0 %v1010_v28, %s2316_s26  ;;  %v1023_v5 = vsel %vm328_vm6, %v1021_v0, 0.0 }
0x1246   :  { %1024 = vadd.xlane.f32.xlu1 %v1023_v5 }
0x1257   :  { %1076 = vrot.lane.b32.xlu1 %v1074_v34, %s2316_s26 }
0x12b7   :  { %v1013_v35 = vpop.permute.xlu0 %1012 }
0x12b8   :  { %v1015_v1 = vsel %vm328_vm6, %v1013_v35, 0.0 }
0x12b9   :  { %1016 = vadd.xlane.f32.xlu0 %v1015_v1 }
0x12d3   :  { %v1025_v36 = vpop.xlane.xlu1 %1024 }
0x12d7   :  { %v1077_v37 = vpop.permute.xlu1 %1076 }
0x12d8   :  { %2080 = vmatmul.mubr.msk.bf16.vlgmr.msra.gmra.mrb[16].mxu1 %vm92_vm0, %v1077_v37 }
0x12d9   :  { %2090 = vmatpush3.bf16.msra.mxu1 %v2421_v48  ;;  %2093 = vmatprep.mubr.msk.bf16.mxu1 %vm2314_vm4, %v2313_v50 }
0x12da   :  { %2091 = vmatprep.subr.bf16.mxu1 %v2313_v50 }
0x12dd   :  { %2092 = vmatpush3.bf16.msra.mxu1 %v2435_v51 }
0x12de   :  { %2103 = vmatprep.subr.bf16.mxu1 %v2313_v50 }
0x1346   :  { %v1017_v38 = vpop.xlane.xlu0 %1016 }
0x1347   :  { %v1026_v39 = vadd.f32 %v1025_v36, %v1017_v38 }
0x1349   :  { %v1028_v40 = vrot.slane %v1026_v39, 1  ;;  %v1031_v42 = vadd.f32 %v1026_v39, %v2408_v30 }
0x134b   :  { %v1032_v41 = vadd.f32 %v1028_v40, %v2410_v31 }
0x134d   :  { %v1035_v43 = vrot.slane %v1032_v41, 7 }
0x134f   :  { %v1036_v45 = vsel %vm105_vm2, %v1035_v43, %v1031_v42 }
0x1350   :  { %v1038_v46 = vsel %vm108_vm3, %v1036_v45, -inf }
0x1351   :  { %1039 = vmax.xlane.f32.xlu0 %v1038_v46 }
0x13ab   :  { %v1115_v47 = vpop.f32.mrb[16].mxu1 }
0x13ac   :  { %v2081_v53 = vpop.f32.mrb[17].mxu1 }
0x13ad   :  { %v1118_v26 = vpop.f32.mrb[18].mxu1 }
0x13ae   :  { %v2082_v54 = vpop.f32.mrb[19].mxu1 }
0x13de   :  { %v1040_v55 = vpop.xlane.xlu0 %1039 }
0x13df   :  { %v1042_v56 = vrot.slane %v1040_v55, 1  ;;  %v1045_v57 = vsub.f32 %v1031_v42, %v1040_v55 }
0x13e1   :  { %v1046_v58 = vsub.f32 %v1032_v41, %v1042_v56  ;;  %v1047_v59 = vmul.f32 1.442695, %v1045_v57 }
0x13e3   :  { %v1049_v60 = vmul.f32 1.442695, %v1046_v58 }
0x13e5   :  { %2202 = vpow2.f32 %v1049_v60 }
0x13e6   :  { %2204 = vpow2.f32 %v1047_v59 }
0x13ef   :  { %v2203_v61 = vpop.eup %2202 }
0x13f0   :  { %v1053_v62 = vrot.slane %v2203_v61, 7  ;;  %v2205_v63 = vpop.eup %2204 }
0x13f2   :  { %v1054_v2 = vsel %vm105_vm2, %v1053_v62, %v2205_v63 }
0x13f3   :  { %v1056_v3 = vsel %vm108_vm3, %v1054_v2, 0.0 }
0x13f4   :  { %1057 = vadd.xlane.f32.xlu0 %v1056_v3 }
0x1481   :  { %v1058_v4 = vpop.xlane.xlu0 %1057 }
0x1482   :  { %2206 = vrcp.f32 %v1058_v4 }
0x148c   :  { %v2207_v44 = vpop.eup %2206 }
0x148d   :  { %v1061_v12 = vrot.slane %v2207_v44, 1  ;;  %v1064_v13 = vmul.f32 %v2207_v44, %v2205_v63 }
0x148f   :  { %v1065_v14 = vmul.f32 %v2203_v61, %v1061_v12  ;;  %v1070_v15 = vmul.f32 %v1066_v7, %v1064_v13 }
0x1491   :  { %v1071_v16 = vmul.f32 %v1067_v11, %v1065_v14  ;;  %1196 = vst.msk [vmem:[#allocation3 + $0x4] sm:$0x1] %vm277_vm5, %v1070_v15  ;;  %v1072_v17 = vpack.c.bf16 %v1070_v15, %v1070_v15 }
0x1493   :  { %v1073_v18 = vpack.c.bf16 %v1071_v16, %v1071_v16  ;;  %1197 = vst.msk [vmem:[#allocation3 + $0xc] sm:$0x1] %vm277_vm5, %v1071_v16  ;;  %v1123_v20 = vunpack.c.l.b16 %v1072_v17 }
0x1495   :  { %v1124_v19 = vunpack.c.l.b16 %v1073_v18 }
0x1497   :  { %v1125_v21 = vrot.slane %v1124_v19, 7 }
0x1499   :  { %v1126_v23 = vsel %vm105_vm2, %v1125_v21, %v1123_v20 }
0x149a   :  { %v1127_v9 = vpack.c.b16 %v1126_v23, %v1126_v23  ;;  %v2687_v23 = vld [vmem:[%s2917_s0] sm:$0xff] }
0x149c   :  { %2086 = vmatmul.mubr.msk.bf16.vlgmr.msra.gmra.mrb[16].mxu0 %vm46_vm1, %v1127_v9  ;;  %v1293_v9 = vrot.slane %v2687_v23, 5 }
0x149d   :  { %2098 = vmatpush3.bf16.msra.mxu0 %v2426_v49  ;;  %2099 = vmatprep.mubr.msk.bf16.mxu0 %vm2314_vm4, %v2313_v50 }
0x149e   :  { %2111 = vmatprep.subr.bf16.mxu0 %v2313_v50 }
0x156f   :  { %v1165_v10 = vpop.f32.mrb[16].mxu0 }
0x1570   :  { %v1166_v24 = vadd.f32 %v1165_v10, %v1115_v47  ;;  %v2087_v25 = vpop.f32.mrb[17].mxu0 }
0x1571   :  { %v1168_v28 = vpop.f32.mrb[18].mxu0 }
0x1572   :  { %v1171_v0 = vadd.f32 %v2465_v8, %v1166_v24  ;;  %v2088_v5 = vpop.f32.mrb[19].mxu0  ;;  %v2693_v24 = vld [vmem:[%s2917_s0 + $0x8] sm:$0xff] }
0x1573   :  { %v1294_v25 = vrot.slane %v2693_v24, 5 }
0x1574   :  { %2208 = vtanh.f32 %v1171_v0  ;;  %v1969_v35 = vmul.f32 -1.442695, %v1171_v0 }
0x1576   :  { %2210 = vpow2.f32 %v1969_v35 }
0x157e   :  { %v2209_v34 = vpop.eup %2208 }
0x157f   :  { %1181 = vrot.lane.b32.xlu0 %v2209_v34, %s2315_s25 }
0x1580   :  { %v2211_v1 = vpop.eup %2210 }
0x1581   :  { %v1175_v49 = vadd.f32 1.0, %v2211_v1 }
0x1583   :  { %2212 = vrcp.f32 %v1175_v49 }
0x158d   :  { %v2213_v36 = vpop.eup %2212 }
0x158e   :  { %v1179_v39 = vmul.f32 %v2213_v36, %v2610_v22 }
0x15f1   :  { %v1182_v37 = vpop.permute.xlu0 %1181 }
0x15f2   :  { %v1184_v38 = vmul.f32 %v2213_v36, %v1182_v37 }
0x15f4   :  { %1186 = vrot.lane.b32.xlu1 %v1184_v38, %s2316_s26 }
0x1666   :  { %v1187_v40 = vpop.permute.xlu1 %1186 }
0x1667   :  { %v2654_v41 = vadd.f32 %v1187_v40, %v1179_v39 }
0x1669   :  { %2214 = vtanh.f32 %v2654_v41  ;;  %v1245_v43 = vmul.f32 %v2654_v41, %v2484_v33 }
0x1673   :  { %v2215_v42 = vpop.eup %2214 }
0x1674   :  { %1192 = vrot.lane.b32.xlu1 %v2215_v42, %s2315_s25  ;;  %v2703_v42 = vld [vmem:[%s2921_s4] sm:$0xff]  }
0x1678   :  { %1247 = vrot.lane.b32.xlu1 %v1245_v43, %s2317_s27 }
0x16e6   :  { %v1193_v45 = vpop.permute.xlu1 %1192 }
0x16e7   :  { %v2661_v46 = vmul.f32 %v2213_v36, %v1193_v45 }
0x16e9   :  { %v1237_v47 = vmul.f32 %v2661_v46, %v2478_v29  ;;  %v1301_v26 = vpack.c.bf16 %v2661_v46, %v2661_v46 }
0x16ea   :  { %v1248_v22 = vpop.permute.xlu1 %1247 }
0x16eb   :  { %1239 = vrot.lane.b32.xlu0 %v1237_v47, %s2316_s26  ;;  %v1250_v53 = vsel %vm328_vm6, %v1248_v22, 0.0 }
0x16ec   :  { %1251 = vadd.xlane.f32.xlu1 %v1250_v53 }
0x16fd   :  { %1303 = vrot.lane.b32.xlu1 %v1301_v26, %s2316_s26 }
0x175d   :  { %v1240_v54 = vpop.permute.xlu0 %1239 }
0x175e   :  { %v1242_v55 = vsel %vm328_vm6, %v1240_v54, 0.0 }
0x175f   :  { %1243 = vadd.xlane.f32.xlu0 %v1242_v55 }
0x1779   :  { %v1252_v56 = vpop.xlane.xlu1 %1251 }
0x177d   :  { %v1304_v57 = vpop.permute.xlu1 %1303 }
0x177e   :  { %2094 = vmatmul.mubr.msk.bf16.vlgmr.msra.gmra.mrb[20].mxu1 %vm92_vm0, %v1304_v57 }
0x177f   :  { %2104 = vmatpush3.bf16.msra.mxu1 %v2421_v48  ;;  %2107 = vmatprep.mubr.msk.bf16.mxu1 %vm2314_vm4, %v2313_v50 }
0x1780   :  { %2105 = vmatprep.subr.bf16.mxu1 %v2313_v50 }
0x1783   :  { %2106 = vmatpush3.bf16.msra.mxu1 %v2435_v51 }
0x1784   :  { %2117 = vmatprep.subr.bf16.mxu1 %v2313_v50 }
0x17ec   :  { %v1244_v58 = vpop.xlane.xlu0 %1243 }
0x17ed   :  { %v1253_v59 = vadd.f32 %v1252_v56, %v1244_v58 }
0x17ef   :  { %v1255_v60 = vrot.slane %v1253_v59, 1  ;;  %v1258_v62 = vadd.f32 %v1253_v59, %v2408_v30 }
0x17f1   :  { %v1259_v61 = vadd.f32 %v1255_v60, %v2410_v31 }
0x17f3   :  { %v1262_v63 = vrot.slane %v1259_v61, 7 }
0x17f5   :  { %v1263_v2 = vsel %vm105_vm2, %v1262_v63, %v1258_v62 }
0x17f6   :  { %v1265_v48 = vsel %vm108_vm3, %v1263_v2, -inf }
0x17f7   :  { %1266 = vmax.xlane.f32.xlu0 %v1265_v48 }
0x1851   :  { %v1342_v3 = vpop.f32.mrb[20].mxu1 }
0x1852   :  { %v2095_v4 = vpop.f32.mrb[21].mxu1 }
0x1853   :  { %v1345_v7 = vpop.f32.mrb[22].mxu1 }
0x1854   :  { %v2096_v44 = vpop.f32.mrb[23].mxu1 }
0x1884   :  { %v1267_v51 = vpop.xlane.xlu0 %1266 }
0x1885   :  { %v1269_v11 = vrot.slane %v1267_v51, 1  ;;  %v1272_v12 = vsub.f32 %v1258_v62, %v1267_v51 }
0x1887   :  { %v1273_v13 = vsub.f32 %v1259_v61, %v1269_v11  ;;  %v1274_v14 = vmul.f32 1.442695, %v1272_v12 }
0x1889   :  { %v1276_v15 = vmul.f32 1.442695, %v1273_v13 }
0x188b   :  { %2216 = vpow2.f32 %v1276_v15  ;;  %v2262_v15 = vld [vmem:[%s2922_s5 + $0x8] sm:$0xff]  }
0x188c   :  { %2218 = vpow2.f32 %v1274_v14  ;;  %v2261_v14 = vld [vmem:[%s2922_s5] sm:$0xff]  }
0x1895   :  { %v2217_v16 = vpop.eup %2216 }
0x1896   :  { %v1280_v17 = vrot.slane %v2217_v16, 7  ;;  %v2219_v18 = vpop.eup %2218 }
0x1898   :  { %v1281_v19 = vsel %vm105_vm2, %v1280_v17, %v2219_v18 }
0x1899   :  { %v1283_v20 = vsel %vm108_vm3, %v1281_v19, 0.0 }
0x189a   :  { %1284 = vadd.xlane.f32.xlu0 %v1283_v20 }
0x1927   :  { %v1285_v21 = vpop.xlane.xlu0 %1284 }
0x1928   :  { %2220 = vrcp.f32 %v1285_v21 }
0x1932   :  { %v2221_v10 = vpop.eup %2220 }
0x1933   :  { %v1288_v28 = vrot.slane %v2221_v10, 1  ;;  %v1291_v0 = vmul.f32 %v2221_v10, %v2219_v18 }
0x1935   :  { %v1292_v5 = vmul.f32 %v2217_v16, %v1288_v28  ;;  %v1297_v34 = vmul.f32 %v1293_v9, %v1291_v0 }
0x1937   :  { %v1298_v35 = vmul.f32 %v1294_v25, %v1292_v5  ;;  %1423 = vst.msk [vmem:[#allocation3 + $0x5] sm:$0x1] %vm277_vm5, %v1297_v34  ;;  %v1299_v1 = vpack.c.bf16 %v1297_v34, %v1297_v34 }
0x1939   :  { %v1300_v49 = vpack.c.bf16 %v1298_v35, %v1298_v35  ;;  %1424 = vst.msk [vmem:[#allocation3 + $0xd] sm:$0x1] %vm277_vm5, %v1298_v35  ;;  %v1350_v37 = vunpack.c.l.b16 %v1299_v1 }
0x193b   :  { %v1351_v36 = vunpack.c.l.b16 %v1300_v49 }
0x193d   :  { %v1352_v38 = vrot.slane %v1351_v36, 7 }
0x193f   :  { %v1353_v39 = vsel %vm105_vm2, %v1352_v38, %v1350_v37 }
0x1940   :  { %v1354_v40 = vpack.c.b16 %v1353_v39, %v1353_v39 }
0x1942   :  { %2100 = vmatmul.mubr.msk.bf16.vlgmr.msra.gmra.mrb[20].mxu0 %vm46_vm1, %v1354_v40 }
0x1943   :  { %2112 = vmatpush3.bf16.msra.mxu0 %v2703_v42  ;;  %2113 = vmatprep.mubr.msk.bf16.mxu0 %vm2314_vm4, %v2313_v50 }
0x1944   :  { %2125 = vmatprep.subr.bf16.mxu0 %v2313_v50 }
0x1a15   :  { %v1392_v43 = vpop.f32.mrb[20].mxu0 }
0x1a16   :  { %v1393_v45 = vadd.f32 %v1392_v43, %v1342_v3  ;;  %v2101_v47 = vpop.f32.mrb[21].mxu0 }
0x1a17   :  { %v1395_v22 = vpop.f32.mrb[22].mxu0 }
0x1a18   :  { %v1398_v53 = vadd.f32 %v2465_v8, %v1393_v45  ;;  %v2102_v26 = vpop.f32.mrb[23].mxu0  ;;  %v1520_v22 = vrot.slane %v2687_v23, 6 }
0x1a19   :  { %v1521_v26 = vrot.slane %v2693_v24, 6 }
0x1a1a   :  { %2222 = vtanh.f32 %v1398_v53  ;;  %v1972_v55 = vmul.f32 -1.442695, %v1398_v53 }
0x1a1c   :  { %2224 = vpow2.f32 %v1972_v55 }
0x1a24   :  { %v2223_v54 = vpop.eup %2222 }
0x1a25   :  { %1408 = vrot.lane.b32.xlu0 %v2223_v54, %s2315_s25 }
0x1a26   :  { %v2225_v56 = vpop.eup %2224 }
0x1a27   :  { %v1402_v57 = vadd.f32 1.0, %v2225_v56 }
0x1a29   :  { %2226 = vrcp.f32 %v1402_v57 }
0x1a33   :  { %v2227_v58 = vpop.eup %2226 }
0x1a34   :  { %v1406_v61 = vmul.f32 %v2227_v58, %v2654_v41 }
0x1a97   :  { %v1409_v59 = vpop.permute.xlu0 %1408 }
0x1a98   :  { %v1411_v60 = vmul.f32 %v2227_v58, %v1409_v59 }
0x1a9a   :  { %1413 = vrot.lane.b32.xlu1 %v1411_v60, %s2316_s26 }
0x1b0c   :  { %v1414_v62 = vpop.permute.xlu1 %1413 }
0x1b0d   :  { %v2713_v63 = vadd.f32 %v1414_v62, %v1406_v61 }
0x1b0f   :  { %2228 = vtanh.f32 %v2713_v63  ;;  %v1472_v2 = vmul.f32 %v2713_v63, %v2484_v33 }
0x1b19   :  { %v2229_v8 = vpop.eup %2228 }
0x1b1a   :  { %1419 = vrot.lane.b32.xlu1 %v2229_v8, %s2315_s25 }
0x1b1e   :  { %1474 = vrot.lane.b32.xlu1 %v1472_v2, %s2317_s27 }
0x1b8c   :  { %v1420_v48 = vpop.permute.xlu1 %1419 }
0x1b8d   :  { %v2720_v3 = vmul.f32 %v2227_v58, %v1420_v48 }
0x1b8f   :  { %v1464_v4 = vmul.f32 %v2720_v3, %v2478_v29  ;;  %v1528_v44 = vpack.c.bf16 %v2720_v3, %v2720_v3 }
0x1b90   :  { %v1475_v41 = vpop.permute.xlu1 %1474 }
0x1b91   :  { %1466 = vrot.lane.b32.xlu0 %v1464_v4, %s2316_s26  ;;  %v1477_v7 = vsel %vm328_vm6, %v1475_v41, 0.0 }
0x1b92   :  { %1478 = vadd.xlane.f32.xlu1 %v1477_v7 }
0x1ba3   :  { %1530 = vrot.lane.b32.xlu1 %v1528_v44, %s2316_s26 }
0x1c03   :  { %v1467_v51 = vpop.permute.xlu0 %1466 }
0x1c04   :  { %v1469_v11 = vsel %vm328_vm6, %v1467_v51, 0.0  ;;  %v2758_v51 = vld [vmem:[%s2923_s6] ss:$0 sm:$0xff]  ;;  %s2319_s6 = smov [#allocation3]  }
0x1c05   :  { %1470 = vadd.xlane.f32.xlu0 %v1469_v11  ;;  %s1923_s3 = sshll.u32 %s2319_s6, 4  ;;  %s1924_s3 = int_to_ptr.vmem [resolvable:$true] %s1923_s3 }
0x1c06   :  { %s2264_s15 = scalar_lea.vmem %s1924_s3, 256  ;;  %p2269_p1 = scmp.lt.s32.totalorder %s1924_s3, %s1924_s3 }
0x1c07   :  { %p2265_p0 = scmp.ne.s32.totalorder %s1924_s3, %s2264_s15  ;;  %p2270_p2 = scmp.lt.s32.totalorder %s2264_s15, %s2264_s15 }
0x1c09   :  { %p2271_p3 = por %p2270_p2, %p2269_p1 }
0x1c0b   :  { %p2272_p4 = pnand %p2271_p3, %p2265_p0 }
0x1c1f   :  { %v1479_v12 = vpop.xlane.xlu1 %1478 }
0x1c23   :  { %v1531_v13 = vpop.permute.xlu1 %1530 }
0x1c24   :  { %2108 = vmatmul.mubr.msk.bf16.vlgmr.msra.gmra.mrb[24].mxu1 %vm92_vm0, %v1531_v13 }
0x1c25   :  { %2118 = vmatpush3.bf16.msra.mxu1 %v2261_v14  ;;  %2121 = vmatprep.mubr.msk.bf16.mxu1 %vm2314_vm4, %v2313_v50 }
0x1c26   :  { %2119 = vmatprep.subr.bf16.mxu1 %v2313_v50 }
0x1c29   :  { %2120 = vmatpush3.bf16.msra.mxu1 %v2262_v15 }
0x1c92   :  { %v1471_v16 = vpop.xlane.xlu0 %1470 }
0x1c93   :  { %v1480_v17 = vadd.f32 %v1479_v12, %v1471_v16 }
0x1c95   :  { %v1482_v18 = vrot.slane %v1480_v17, 1  ;;  %v1485_v20 = vadd.f32 %v1480_v17, %v2408_v30 }
0x1c97   :  { %v1486_v19 = vadd.f32 %v1482_v18, %v2410_v31 }
0x1c99   :  { %v1489_v21 = vrot.slane %v1486_v19, 7 }
0x1c9b   :  { %v1490_v9 = vsel %vm105_vm2, %v1489_v21, %v1485_v20 }
0x1c9c   :  { %v1492_v10 = vsel %vm108_vm3, %v1490_v9, -inf }
0x1c9d   :  { %1493 = vmax.xlane.f32.xlu0 %v1492_v10 }
0x1cf7   :  { %v1569_v25 = vpop.f32.mrb[24].mxu1 }
0x1cf8   :  { %v2109_v28 = vpop.f32.mrb[25].mxu1 }
0x1cf9   :  { %v1572_v0 = vpop.f32.mrb[26].mxu1 }
0x1cfa   :  { %v2110_v5 = vpop.f32.mrb[27].mxu1 }
0x1d2a   :  { %v1494_v34 = vpop.xlane.xlu0 %1493 }
0x1d2b   :  { %v1496_v35 = vrot.slane %v1494_v34, 1  ;;  %v1499_v1 = vsub.f32 %v1485_v20, %v1494_v34 }
0x1d2d   :  { %v1500_v49 = vsub.f32 %v1486_v19, %v1496_v35  ;;  %v1501_v36 = vmul.f32 1.442695, %v1499_v1 }
0x1d2f   :  { %v1503_v37 = vmul.f32 1.442695, %v1500_v49 }
0x1d31   :  { %2230 = vpow2.f32 %v1503_v37 }
0x1d32   :  { %2232 = vpow2.f32 %v1501_v36 }
0x1d3b   :  { %v2231_v38 = vpop.eup %2230 }
0x1d3c   :  { %v1507_v39 = vrot.slane %v2231_v38, 7  ;;  %v2233_v40 = vpop.eup %2232 }
0x1d3e   :  { %v1508_v43 = vsel %vm105_vm2, %v1507_v39, %v2233_v40 }
0x1d3f   :  { %v1510_v45 = vsel %vm108_vm3, %v1508_v43, 0.0 }
0x1d40   :  { %1511 = vadd.xlane.f32.xlu0 %v1510_v45 }
0x1dcd   :  { %v1512_v47 = vpop.xlane.xlu0 %1511 }
0x1dce   :  { %2234 = vrcp.f32 %v1512_v47 }
0x1dd8   :  { %v2235_v53 = vpop.eup %2234 }
0x1dd9   :  { %v1515_v54 = vrot.slane %v2235_v53, 1  ;;  %v1518_v55 = vmul.f32 %v2235_v53, %v2233_v40 }
0x1ddb   :  { %v1519_v56 = vmul.f32 %v2231_v38, %v1515_v54  ;;  %v1524_v57 = vmul.f32 %v1520_v22, %v1518_v55 }
0x1ddd   :  { %v1525_v58 = vmul.f32 %v1521_v26, %v1519_v56  ;;  %1650 = vst.msk [vmem:[#allocation3 + $0x6] sm:$0x1] %vm277_vm5, %v1524_v57  ;;  %v1526_v59 = vpack.c.bf16 %v1524_v57, %v1524_v57 }
0x1ddf   :  { %v1527_v60 = vpack.c.bf16 %v1525_v58, %v1525_v58  ;;  %1651 = vst.msk [vmem:[#allocation3 + $0xe] sm:$0x1] %vm277_vm5, %v1525_v58  ;;  %v1577_v62 = vunpack.c.l.b16 %v1526_v59 }
0x1de1   :  { %v1578_v61 = vunpack.c.l.b16 %v1527_v60 }
0x1de3   :  { %v1579_v8 = vrot.slane %v1578_v61, 7 }
0x1de5   :  { %v1580_v2 = vsel %vm105_vm2, %v1579_v8, %v1577_v62  ;;  %v1747_v8 = vrot.slane %v2687_v23, 7 }
0x1de6   :  { %v1581_v48 = vpack.c.b16 %v1580_v2, %v1580_v2 }
0x1de8   :  { %2114 = vmatmul.mubr.msk.bf16.vlgmr.msra.gmra.mrb[24].mxu0 %vm46_vm1, %v1581_v48  ;;  %v1748_v48 = vrot.slane %v2693_v24, 7  ;;  %v2318_v24 = vmov 1966171168  }
0x1de9   :  { %2126 = vmatpush3.bf16.msra.mxu0 %v2703_v42  ;;  %2127 = vmatprep.mubr.msk.bf16.mxu0 %vm2314_vm4, %v2313_v50 }
0x1ebb   :  { %v1619_v4 = vpop.f32.mrb[24].mxu0 }
0x1ebc   :  { %v1620_v41 = vadd.f32 %v1619_v4, %v1569_v25  ;;  %v2115_v7 = vpop.f32.mrb[25].mxu0 }
0x1ebd   :  { %v1622_v44 = vpop.f32.mrb[26].mxu0 }
0x1ebe   :  { %v1625_v11 = vadd.f32 %v2758_v51, %v1620_v41  ;;  %v2116_v12 = vpop.f32.mrb[27].mxu0 }
0x1ec0   :  { %2236 = vtanh.f32 %v1625_v11  ;;  %v1975_v42 = vmul.f32 -1.442695, %v1625_v11 }
0x1ec2   :  { %2238 = vpow2.f32 %v1975_v42 }
0x1eca   :  { %v2237_v13 = vpop.eup %2236 }
0x1ecb   :  { %1635 = vrot.lane.b32.xlu0 %v2237_v13, %s2315_s25 }
0x1ecc   :  { %v2239_v14 = vpop.eup %2238 }
0x1ecd   :  { %v1629_v50 = vadd.f32 1.0, %v2239_v14 }
0x1ecf   :  { %2240 = vrcp.f32 %v1629_v50 }
0x1ed9   :  { %v2241_v15 = vpop.eup %2240 }
0x1eda   :  { %v1633_v18 = vmul.f32 %v2241_v15, %v2713_v63 }
0x1f3d   :  { %v1636_v16 = vpop.permute.xlu0 %1635 }
0x1f3e   :  { %v1638_v17 = vmul.f32 %v2241_v15, %v1636_v16  ;;  %v282_v16 = vunpack.c.l.s4 %v2318_v24 }
0x1f40   :  { %1640 = vrot.lane.b32.xlu1 %v1638_v17, %s2316_s26  ;;  %v284_v17 = vlaneseq }
0x1fb2   :  { %v1641_v19 = vpop.permute.xlu1 %1640 }
0x1fb3   :  { %v2764_v20 = vadd.f32 %v1641_v19, %v1633_v18  ;;  %v283_v18 = vunpack.c.0.s8 %v282_v16  ;;  %v285_v19 = vshrl.u32 %v284_v17, 7 }
0x1fb5   :  { %2242 = vtanh.f32 %v2764_v20  ;;  %v1699_v9 = vmul.f32 %v2764_v20, %v2484_v33 }
0x1fbf   :  { %v2243_v21 = vpop.eup %2242 }
0x1fc0   :  { %1646 = vrot.lane.b32.xlu1 %v2243_v21, %s2315_s25 }
0x1fc4   :  { %1701 = vrot.lane.b32.xlu1 %v1699_v9, %s2317_s27 }
0x2032   :  { %v1647_v10 = vpop.permute.xlu1 %1646 }
0x2033   :  { %v2771_v25 = vmul.f32 %v2241_v15, %v1647_v10 }
0x2035   :  { %v1691_v28 = vmul.f32 %v2771_v25, %v2478_v29  ;;  %v1755_v5 = vpack.c.bf16 %v2771_v25, %v2771_v25 }
0x2036   :  { %v1702_v63 = vpop.permute.xlu1 %1701 }
0x2037   :  { %1693 = vrot.lane.b32.xlu0 %v1691_v28, %s2316_s26  ;;  %v1704_v0 = vsel %vm328_vm6, %v1702_v63, 0.0  ;;  %v2794_v28 = vsub.s32 %v283_v18, %v285_v19 }
0x2038   :  { %1705 = vadd.xlane.f32.xlu1 %v1704_v0 }
0x2049   :  { %1757 = vrot.lane.b32.xlu1 %v1755_v5, %s2316_s26 }
0x20a9   :  { %v1694_v33 = vpop.permute.xlu0 %1693 }
0x20aa   :  { %v1696_v34 = vsel %vm328_vm6, %v1694_v33, 0.0  ;;  %v287_v33 = vrot.slane %v2480_v32, %v2794_v28 }
0x20ab   :  { %1697 = vadd.xlane.f32.xlu0 %v1696_v34 }
0x20ac   :  { %v288_v34 = vcombine.high %v287_v33, %v287_v33 }
0x20c5   :  { %v1706_v35 = vpop.xlane.xlu1 %1705 }
0x20c9   :  { %v1758_v1 = vpop.permute.xlu1 %1757 }
0x20ca   :  { %2122 = vmatmul.mubr.msk.bf16.vlgmr.msra.gmra.mrb[28].mxu1 %vm92_vm0, %v1758_v1 }
0x2138   :  { %v1698_v29 = vpop.xlane.xlu0 %1697 }
0x2139   :  { %v1707_v49 = vadd.f32 %v1706_v35, %v1698_v29  ;;  %v524_v35 = vrot.slane %v2529_v52, %v2794_v28  ;;  %v751_v29 = vrot.slane %v2573_v6, %v2794_v28  ;;  %v1205_v6 = vrot.slane %v2661_v46, %v2794_v28 }
0x213a   :  { %v1659_v46 = vrot.slane %v2771_v25, %v2794_v28 }
0x213b   :  { %v1709_v36 = vrot.slane %v1707_v49, 1  ;;  %v1712_v38 = vadd.f32 %v1707_v49, %v2408_v30  ;;  %v525_v1 = vcombine.high %v524_v35, %v524_v35  ;;  %v302_v49 = vrot.slane %v288_v34, %v2794_v28 }
0x213c   :  { %v1667_v17 = vrot.slane %v1659_v46, %v2794_v28 }
0x213d   :  { %v1713_v37 = vadd.f32 %v1709_v36, %v2410_v31 }
0x213f   :  { %v1716_v39 = vrot.slane %v1713_v37, 7 }
0x2141   :  { %v1717_v40 = vsel %vm105_vm2, %v1716_v39, %v1712_v38  ;;  %v539_v39 = vrot.slane %v525_v1, %v2794_v28 }
0x2142   :  { %v1719_v43 = vsel %vm108_vm3, %v1717_v40, -inf }
0x2143   :  { %1720 = vmax.xlane.f32.xlu0 %v1719_v43 }
0x219d   :  { %v1796_v45 = vpop.f32.mrb[28].mxu1 }
0x219e   :  { %v2123_v47 = vpop.f32.mrb[29].mxu1 }
0x219f   :  { %v1799_v22 = vpop.f32.mrb[30].mxu1 }
0x21a0   :  { %v2124_v53 = vpop.f32.mrb[31].mxu1 }
0x21d0   :  { %v1721_v26 = vpop.xlane.xlu0 %1720 }
0x21d1   :  { %v1723_v54 = vrot.slane %v1721_v26, 1  ;;  %v1726_v55 = vsub.f32 %v1712_v38, %v1721_v26  ;;  %v978_v38 = vrot.slane %v2617_v27, %v2794_v28  ;;  %v1432_v27 = vrot.slane %v2720_v3, %v2794_v28 }
0x21d3   :  { %v1727_v56 = vsub.f32 %v1713_v37, %v1723_v54  ;;  %v1728_v57 = vmul.f32 1.442695, %v1726_v55  ;;  %v2805_v37 = vsub.s32 0, %v285_v19  ;;  %v979_v52 = vcombine.high %v978_v38, %v978_v38 }
0x21d4   :  { %v1433_v53 = vcombine.high %v1432_v27, %v1432_v27  ;;  %v1660_v55 = vcombine.high %v1659_v46, %v1659_v46  ;;  %v1440_v24 = vrot.slane %v1432_v27, %v2794_v28 }
0x21d5   :  { %v1730_v58 = vmul.f32 1.442695, %v1727_v56  ;;  %v310_v32 = vrot.slane %v302_v49, %v2805_v37  ;;  %v547_v40 = vrot.slane %v539_v39, %v2805_v37  ;;  %v993_v22 = vrot.slane %v979_v52, %v2794_v28 }
0x21d6   :  { %v1447_v3 = vrot.slane %v1433_v53, %v2794_v28  ;;  %v1451_v18 = vrot.slane %v1440_v24, %v2805_v37 }
0x21d7   :  { %2244 = vpow2.f32 %v1730_v58  ;;  %v1001_v26 = vrot.slane %v993_v22, %v2805_v37  ;;  %v1674_v58 = vrot.slane %v1660_v55, %v2794_v28 }
0x21d8   :  { %2246 = vpow2.f32 %v1728_v57  ;;  %v1455_v57 = vrot.slane %v1447_v3, %v2805_v37 }
0x21d9   :  { %v1682_v25 = vrot.slane %v1674_v58, %v2805_v37 }
0x21e1   :  { %v2245_v31 = vpop.eup %2244 }
0x21e2   :  { %v1734_v30 = vrot.slane %v2245_v31, 7  ;;  %v2247_v59 = vpop.eup %2246 }
0x21e4   :  { %v1735_v60 = vsel %vm105_vm2, %v1734_v30, %v2247_v59 }
0x21e5   :  { %v1737_v61 = vsel %vm108_vm3, %v1735_v60, 0.0 }
0x21e6   :  { %1738 = vadd.xlane.f32.xlu0 %v1737_v61 }
0x2273   :  { %v1739_v62 = vpop.xlane.xlu0 %1738 }
0x2274   :  { %2248 = vrcp.f32 %v1739_v62 }
0x227e   :  { %v2249_v2 = vpop.eup %2248 }
0x227f   :  { %v1742_v4 = vrot.slane %v2249_v2, 1  ;;  %v1745_v41 = vmul.f32 %v2249_v2, %v2247_v59 }
0x2281   :  { %v1746_v7 = vmul.f32 %v2245_v31, %v1742_v4  ;;  %v1751_v44 = vmul.f32 %v1747_v8, %v1745_v41  ;;  %v295_v8 = vrot.slane %v287_v33, %v2794_v28  ;;  %v532_v4 = vrot.slane %v524_v35, %v2794_v28 }
0x2283   :  { %v1752_v11 = vmul.f32 %v1748_v48, %v1746_v7  ;;  %1877 = vst.msk [vmem:[#allocation3 + $0x7] sm:$0x1] %vm277_vm5, %v1751_v44  ;;  %v1753_v12 = vpack.c.bf16 %v1751_v44, %v1751_v44  ;;  %v306_v48 = vrot.slane %v295_v8, %v2805_v37  ;;  %v543_v7 = vrot.slane %v532_v4, %v2805_v37 }
0x2284   :  { %v759_v44 = vrot.slane %v751_v29, %v2794_v28 }
0x2285   :  { %v1754_v13 = vpack.c.bf16 %v1752_v11, %v1752_v11  ;;  %1878 = vst.msk [vmem:[#allocation3 + $0xf] sm:$0x1] %vm277_vm5, %v1752_v11  ;;  %v1804_v14 = vunpack.c.l.b16 %v1753_v12 }
0x2286   :  { %v770_v12 = vrot.slane %v759_v44, %v2805_v37 }
0x2287   :  { %v1805_v42 = vunpack.c.l.b16 %v1754_v13  ;;  %v986_v13 = vrot.slane %v978_v38, %v2794_v28 }
0x2289   :  { %v1806_v50 = vrot.slane %v1805_v42, 7 }
0x228b   :  { %v1807_v15 = vsel %vm105_vm2, %v1806_v50, %v1804_v14  ;;  %v997_v14 = vrot.slane %v986_v13, %v2805_v37  ;;  %v1213_v50 = vrot.slane %v1205_v6, %v2794_v28 }
0x228c   :  { %v1808_v23 = vpack.c.b16 %v1807_v15, %v1807_v15 }
0x228e   :  { %2128 = vmatmul.mubr.msk.bf16.vlgmr.msra.gmra.mrb[28].mxu0 %vm46_vm1, %v1808_v23  ;;  %v1224_v23 = vrot.slane %v1213_v50, %v2805_v37 }
0x2361   :  { %v1846_v21 = vpop.f32.mrb[28].mxu0 }
0x2362   :  { %v1847_v9 = vadd.f32 %v1846_v21, %v1796_v45  ;;  %v2129_v10 = vpop.f32.mrb[29].mxu0  ;;  %v1206_v45 = vcombine.high %v1205_v6, %v1205_v6  ;;  %v1678_v21 = vrot.slane %v1667_v17, %v2805_v37 }
0x2363   :  { %v1849_v63 = vpop.f32.mrb[30].mxu0 }
0x2364   :  { %v1852_v0 = vadd.f32 %v2758_v51, %v1847_v9  ;;  %v2130_v5 = vpop.f32.mrb[31].mxu0  ;;  %v752_v51 = vcombine.high %v751_v29, %v751_v29  ;;  %v1220_v54 = vrot.slane %v1206_v45, %v2794_v28 }
0x2366   :  { %2250 = vtanh.f32 %v1852_v0  ;;  %v766_v43 = vrot.slane %v752_v51, %v2794_v28  ;;  %v1228_v56 = vrot.slane %v1220_v54, %v2805_v37  ;;  %v1978_v31 = vmul.f32 -1.442695, %v1852_v0 }
0x2368   :  { %v774_v47 = vrot.slane %v766_v43, %v2805_v37  ;;  %2252 = vpow2.f32 %v1978_v31 }
0x2370   :  { %v2251_v36 = vpop.eup %2250 }
0x2371   :  { %1862 = vrot.lane.b32.xlu0 %v2251_v36, %s2315_s25 }
0x2372   :  { %v2253_v30 = vpop.eup %2252 }
0x2373   :  { %v1856_v59 = vadd.f32 1.0, %v2253_v30 }
0x2375   :  { %313 = vrot.lane.b32.xlu0 %v310_v32, %s2316_s26  ;;  %2254 = vrcp.f32 %v1856_v59 }
0x2379   :  { %550 = vrot.lane.b32.xlu0 %v547_v40, %s2316_s26 }
0x237d   :  { %777 = vrot.lane.b32.xlu0 %v774_v47, %s2316_s26 }
0x237f   :  { %v2835_v60 = vpop.eup %2254 }
0x2380   :  { %v1860_v9 = vmul.f32 %v2835_v60, %v2764_v20 }
0x2381   :  { %1004 = vrot.lane.b32.xlu0 %v1001_v26, %s2316_s26 }
0x2385   :  { %1231 = vrot.lane.b32.xlu0 %v1228_v56, %s2316_s26 }
0x2389   :  { %1458 = vrot.lane.b32.xlu0 %v1455_v57, %s2316_s26 }
0x238d   :  { %1685 = vrot.lane.b32.xlu0 %v1682_v25, %s2316_s26 }
0x23e3   :  { %v1863_v61 = vpop.permute.xlu0 %1862 }
0x23e4   :  { %v1865_v62 = vmul.f32 %v2835_v60, %v1863_v61 }
0x23e6   :  { %1867 = vrot.lane.b32.xlu1 %v1865_v62, %s2316_s26 }
0x23e7   :  { %v314_v2 = vpop.permute.xlu0 %313 }
0x23e8   :  { %319 = vst.msk [vmem:[#allocation5 + $0x8] sm:$0x1] %vm317_vm7, %v314_v2 }
0x23ea   :  { %311 = vrot.lane.b32.xlu1 %v306_v48, %s2316_s26 }
0x23eb   :  { %v551_v41 = vpop.permute.xlu0 %550 }
0x23ec   :  { %555 = vst.msk [vmem:[#allocation5 + $0x9] sm:$0x1] %vm317_vm7, %v551_v41 }
0x23ee   :  { %548 = vrot.lane.b32.xlu1 %v543_v7, %s2316_s26 }
0x23ef   :  { %v778_v11 = vpop.permute.xlu0 %777 }
0x23f0   :  { %782 = vst.msk [vmem:[#allocation5 + $0xa] sm:$0x1] %vm317_vm7, %v778_v11 }
0x23f2   :  { %775 = vrot.lane.b32.xlu1 %v770_v12, %s2316_s26 }
0x23f3   :  { %v1005_v42 = vpop.permute.xlu0 %1004 }
0x23f4   :  { %1009 = vst.msk [vmem:[#allocation5 + $0xb] sm:$0x1] %vm317_vm7, %v1005_v42 }
0x23f6   :  { %1002 = vrot.lane.b32.xlu1 %v997_v14, %s2316_s26 }
0x23f7   :  { %v1232_v15 = vpop.permute.xlu0 %1231 }
0x23f8   :  { %1236 = vst.msk [vmem:[#allocation5 + $0xc] sm:$0x1] %vm317_vm7, %v1232_v15 }
0x23fa   :  { %1229 = vrot.lane.b32.xlu1 %v1224_v23, %s2316_s26 }
0x23fb   :  { %v1459_v16 = vpop.permute.xlu0 %1458 }
0x23fc   :  { %1463 = vst.msk [vmem:[#allocation5 + $0xd] sm:$0x1] %vm317_vm7, %v1459_v16 }
0x23fe   :  { %1456 = vrot.lane.b32.xlu1 %v1451_v18, %s2316_s26 }
0x23ff   :  { %v1686_v19 = vpop.permute.xlu0 %1685 }
0x2400   :  { %1690 = vst.msk [vmem:[#allocation5 + $0xe] sm:$0x1] %vm317_vm7, %v1686_v19 }
0x2402   :  { %1683 = vrot.lane.b32.xlu1 %v1678_v21, %s2316_s26 }
0x2458   :  { %v1868_v10 = vpop.permute.xlu1 %1867 }
0x2459   :  { %v1870_v63 = vadd.f32 %v1868_v10, %v1860_v9 }
0x245b   :  { %2256 = vtanh.f32 %v1870_v63 }
0x245c   :  { %v312_v0 = vpop.permute.xlu1 %311 }
0x245d   :  { %318 = vst.msk [vmem:[#allocation5] sm:$0x1] %vm317_vm7, %v312_v0 }
0x2460   :  { %v549_v5 = vpop.permute.xlu1 %548 }
0x2461   :  { %554 = vst.msk [vmem:[#allocation5 + $0x1] sm:$0x1] %vm317_vm7, %v549_v5 }
0x2464   :  { %v776_v33 = vpop.permute.xlu1 %775 }
0x2465   :  { %v2257_v34 = vpop.eup %2256  ;;  %781 = vst.msk [vmem:[#allocation5 + $0x2] sm:$0x1] %vm317_vm7, %v776_v33 }
0x2466   :  { %1873 = vrot.lane.b32.xlu1 %v2257_v34, %s2315_s25 }
0x2468   :  { %v1003_v35 = vpop.permute.xlu1 %1002 }
0x2469   :  { %1008 = vst.msk [vmem:[#allocation5 + $0x3] sm:$0x1] %vm317_vm7, %v1003_v35 }
0x246c   :  { %v1230_v1 = vpop.permute.xlu1 %1229 }
0x246d   :  { %1235 = vst.msk [vmem:[#allocation5 + $0x4] sm:$0x1] %vm317_vm7, %v1230_v1 }
0x2470   :  { %v1457_v20 = vpop.permute.xlu1 %1456 }
0x2471   :  { %1462 = vst.msk [vmem:[#allocation5 + $0x5] sm:$0x1] %vm317_vm7, %v1457_v20 }
0x2474   :  { %v1684_v29 = vpop.permute.xlu1 %1683 }
0x2475   :  { %1689 = vst.msk [vmem:[#allocation5 + $0x6] sm:$0x1] %vm317_vm7, %v1684_v29 }
0x24d8   :  { %v1874_v49 = vpop.permute.xlu1 %1873 }
0x24d9   :  { %2275 = shalt.err (!%p2272_p4)
}
0x24da   :  { %s2276_s17 = scalar_lea.hbm %s2925_s8, 256 }
0x24db   :  { %p2277_p5 = scmp.ne.s32.totalorder %s2925_s8, %s2276_s17  ;;  %p2280_p6 = scmp.lt.u32.totalorder %s2276_s17, %s2925_s8 }
0x24dd   :  { %p2282_p7 = pnand %p2280_p6, %p2277_p5 }
0x24df   :  { %2285 = shalt.err (!%p2282_p7)
}
0x24e0   :  { %s2320_s21 = smov 128   ;;  %s2321_s22 = smov 8   ;;  %v1876_v36 = vmul.f32 %v2835_v60, %v1874_v49 }
0x24e1   :  { %1929 = dma.vmem_to_hbm [thread:$0]  %s1924_s3, 256, %s2925_s8, [#allocation4], %s2320_s21, %s2320_s21, %s2321_s22  }
0x24e2   :  { %v1886_v51 = vrot.slane %v1876_v36, %v2794_v28  ;;  %s2322_s25 = smov [#allocation5]  }
0x24e3   :  { %s1935_s27 = sshll.u32 %s2322_s25, 4  ;;  %s1936_s27 = int_to_ptr.vmem [resolvable:$true] %s1935_s27 }
0x24e4   :  { %v1887_v38 = vcombine.high %v1886_v51, %v1886_v51  ;;  %v1894_v32 = vrot.slane %v1886_v51, %v2794_v28  ;;  %s2286_s8 = scalar_lea.vmem %s1936_s27, 256  ;;  %p2291_p9 = scmp.lt.s32.totalorder %s1936_s27, %s1936_s27 }
0x24e5   :  { %p2287_p8 = scmp.ne.s32.totalorder %s1936_s27, %s2286_s8  ;;  %p2292_p10 = scmp.lt.s32.totalorder %s2286_s8, %s2286_s8 }
0x24e6   :  { %v1901_v39 = vrot.slane %v1887_v38, %v2794_v28  ;;  %v1905_v52 = vrot.slane %v1894_v32, %v2805_v37 }
0x24e7   :  { %p2293_p11 = por %p2292_p10, %p2291_p9 }
0x24e8   :  { %1910 = vrot.lane.b32.xlu0 %v1905_v52, %s2316_s26  ;;  %v1909_v6 = vrot.slane %v1901_v39, %v2805_v37 }
0x24e9   :  { %p2294_p12 = pnand %p2293_p11, %p2287_p8 }
0x24ea   :  { %1912 = vrot.lane.b32.xlu1 %v1909_v6, %s2316_s26 }
0x255a   :  { %v1911_v40 = vpop.permute.xlu0 %1910 }
0x255b   :  { %1916 = vst.msk [vmem:[#allocation5 + $0x7] sm:$0x1] %vm317_vm7, %v1911_v40 }
0x255c   :  { %v1913_v43 = vpop.permute.xlu1 %1912 }
0x255d   :  { %1917 = vst.msk [vmem:[#allocation5 + $0xf] sm:$0x1] %vm317_vm7, %v1913_v43 }
0x255e   :  { %2297 = shalt.err (!%p2294_p12)
}
0x255f   :  { %s2298_s26 = scalar_lea.hbm %s2926_s9, 256 }
0x2560   :  { %p2299_p13 = scmp.ne.s32.totalorder %s2926_s9, %s2298_s26  ;;  %p2302_p0 = scmp.lt.u32.totalorder %s2298_s26, %s2926_s9 }
0x2562   :  { %p2304_p1 = pnand %p2302_p0, %p2299_p13 }
0x2564   :  { %2307 = shalt.err (!%p2304_p1)
}
0x2565   :  { %1941 = dma.vmem_to_hbm [thread:$0]  %s1936_s27, 256, %s2926_s9, [#allocation6], %s2320_s21, %s2320_s21, %s2321_s22  }
0x2566   :  { %2308 = dma.done.wait [#allocation4], 256  }
0x2567   :  { %2309 = vsyncadd [#allocation4], 4294967040 }
0x2568   :  { %2310 = dma.done.wait [#allocation6], 256  }
0x2569   :  { %2311 = vsyncadd [#allocation6], 4294967040 }
0x256a   :  { %1948 = vsyncpa [#allocation4], 1 }
0x256b   :  { %1949 = vsyncpa [#allocation6], 1 }

</bundles_post_ra>
